<compile_context>
chip_gen: v7x
topology: tpu7x:2x2x1
jax: 0.10.0
libtpu: 0.0.40
codegen_flags: <defaults>
</compile_context>

<pallas_src>
import numpy as np

import jax
import jax.numpy as jnp
from jax.experimental import pallas as pl
from jax.experimental.pallas import tpu as pltpu

BATCH_TILE = 128  # images per grid step for large N (MXU-width M dims)


def _round_up(v, m):
    return (v + m - 1) // m * m


# ---------------------------------------------------------------------------
# Fused Pallas kernel: conv1+pool+relu -> conv2+pool+relu -> FC head -> softmax
# ---------------------------------------------------------------------------

def net_kernel(x_ref, t1_ref, b1t_ref, t2_ref, b2t_ref,
               fw1_ref, fb1_ref, fw2_ref, fb2_ref, o_ref):
    """One batch tile of B images, fully resident in VMEM.

    x_ref   : (6B, 256)   bf16  conv1 lhs; row = u*B + b, lane = z*32 + w
    t1_ref  : (256, 1024) bf16  banded conv1 weights, col = q*256 + dw*128 + wp*10 + c
    b1t_ref : (1, 128)    f32   conv1 bias tiled over wp
    t2_ref  : (768, 512)  bf16  banded conv2 weights, col = dh2*256 + dw2*128 + wp2*20 + c2
    b2t_ref : (1, 128)    f32   conv2 bias tiled over wp2
    fw1_ref : (512, 128)  bf16  fc1 weight (flatten + pooled-row layout folded in)
    fb1_ref : (1, 128)    f32   fc1 bias (padded 50 -> 128 with zeros)
    fw2_ref : (128, 128)  bf16  fc2 weight padded to 128x128
    fb2_ref : (1, 128)    f32   fc2 bias, padded lanes = -1e30 (softmax-neutral)
    o_ref   : (B, 128)    f32   softmax probabilities (first 2 lanes are real)
    """
    B = o_ref.shape[0]

    # ---- Stage 1: Conv2d(1,10,5) -> MaxPool2d(2) -> ReLU  (one MXU matmul) -------
    acc1 = jnp.dot(x_ref[...], t1_ref[...],
                   preferred_element_type=jnp.float32)            # (6B, 1024)
    me = jnp.maximum(acc1[:, 0:256], acc1[:, 256:512])            # pool over dh, even hp
    mo = jnp.maximum(acc1[:, 512:768], acc1[:, 768:1024])         # pool over dh, odd hp
    b1t = b1t_ref[...]
    y1e = jnp.maximum(jnp.maximum(me[:, 0:128], me[:, 128:256]) + b1t, 0.0)
    y1o = jnp.maximum(jnp.maximum(mo[:, 0:128], mo[:, 128:256]) + b1t, 0.0)
    y1e = y1e.astype(jnp.bfloat16)   # (6B, 128); row u*B + b holds pooled row 2u
    y1o = y1o.astype(jnp.bfloat16)   # (6B, 128); row u*B + b holds pooled row 2u+1

    # ---- Stage 2: Conv2d(10,20,5) -> Dropout(id) -> MaxPool2d(2) -> ReLU ---------
    # Lane block z2 of lhs2 holds stage-1 pooled rows 2*hp2 + z2 (z2 = dh2 + i2).
    parts = []
    for z2 in range(6):
        src = y1e if z2 % 2 == 0 else y1o
        parts.append(src[(z2 // 2) * B:(z2 // 2) * B + 4 * B, :])
    lhs2 = jnp.concatenate(parts, axis=1)                          # (4B, 768) bf16
    acc2 = jnp.dot(lhs2, t2_ref[...],
                   preferred_element_type=jnp.float32)             # (4B, 512)
    m2 = jnp.maximum(acc2[:, 0:256], acc2[:, 256:512])             # pool over dh2
    y2 = jnp.maximum(jnp.maximum(m2[:, 0:128], m2[:, 128:256]) + b2t_ref[...], 0.0)
    y2 = y2.astype(jnp.bfloat16)     # (4B, 128); row hp2*B + b, col = wp2*20 + c2

    # ---- FC head: Linear(320,50) -> ReLU -> Dropout(id) -> Linear(50,2) -> Softmax
    fc_in = jnp.concatenate([y2[r * B:(r + 1) * B, :] for r in range(4)], axis=1)  # (B,512)
    h = jnp.dot(fc_in, fw1_ref[...], preferred_element_type=jnp.float32)
    h = jnp.maximum(h + fb1_ref[...], 0.0).astype(jnp.bfloat16)                    # (B,128)

    logits = jnp.dot(h, fw2_ref[...], preferred_element_type=jnp.float32) + fb2_ref[...]
    m = jnp.max(logits, axis=-1, keepdims=True)
    e = jnp.exp(logits - m)          # padded lanes (-1e30 bias) underflow to exactly 0
    o_ref[...] = e * pl.reciprocal(jnp.sum(e, axis=-1, keepdims=True), approx=True)


# ---------------------------------------------------------------------------
# Wrapper: cheap host-side relayout + single pallas_call
# ---------------------------------------------------------------------------

def net_forward(x_nchw, prep):
    """x_nchw: (N, 1, 28, 28) float32 -> (N, 2) softmax probabilities."""
    N = x_nchw.shape[0]
    B = BATCH_TILE if N >= BATCH_TILE else _round_up(N, 16)
    n_pad = -N % B
    Np = N + n_pad
    n_blocks = Np // B

    # Host relayout (tiny, XLA glue): pad W 28->32, fold the 8 conv-row shifts into
    # lanes (lane = z*32 + w), and order rows (block, u, image) so each grid step
    # reads one contiguous lane-dense (6B, 256) slab.
    x = x_nchw[:, 0, :, :].astype(jnp.float32)               # (N, 28, 28)
    x = jnp.pad(x, ((0, n_pad), (0, 0), (0, 4)))             # (Np, 28, 32)
    xz = jnp.stack([x[:, 4 * u:4 * u + 8, :].reshape(Np, 256) for u in range(6)],
                   axis=0)                                    # (6, Np, 256)
    xz = xz.reshape(6, n_blocks, B, 256).transpose(1, 0, 2, 3).reshape(Np * 6, 256)
    xz = xz.astype(jnp.bfloat16)

    out = pl.pallas_call(
        net_kernel,
        out_shape=jax.ShapeDtypeStruct((Np, 128), jnp.float32),
        grid=(n_blocks,),
        in_specs=[
            pl.BlockSpec((6 * B, 256), lambda nb: (nb, 0)),   # input tile (lane-dense)
            pl.BlockSpec((256, 1024), lambda nb: (0, 0)),     # T1 (resident)
            pl.BlockSpec((1, 128), lambda nb: (0, 0)),        # conv1 bias
            pl.BlockSpec((768, 512), lambda nb: (0, 0)),      # T2 (resident)
            pl.BlockSpec((1, 128), lambda nb: (0, 0)),        # conv2 bias
            pl.BlockSpec((512, 128), lambda nb: (0, 0)),      # fc1 weight
            pl.BlockSpec((1, 128), lambda nb: (0, 0)),        # fc1 bias
            pl.BlockSpec((128, 128), lambda nb: (0, 0)),      # fc2 weight (padded)
            pl.BlockSpec((1, 128), lambda nb: (0, 0)),        # fc2 bias
        ],
        out_specs=pl.BlockSpec((B, 128), lambda nb: (nb, 0)),
        compiler_params=pltpu.CompilerParams(
            dimension_semantics=("parallel",),    # batch blocks split across TCs (v7x)
            vmem_limit_bytes=32 * 1024 * 1024,    # ~8 MiB actually used at B=128
        ),
    )(xz, prep["T1"], prep["b1t"], prep["T2"], prep["b2t"],
      prep["FW1"], prep["FB1"], prep["FW2"], prep["FB2"])

    return out[:N, :2]


# ---------------------------------------------------------------------------
# Offline parameter preparation: fold im2col + pooling layout into the weights
# ---------------------------------------------------------------------------

def prepare_params(params):
    w1 = np.asarray(params["conv1_w"], np.float32)   # (10, 1, 5, 5)
    b1 = np.asarray(params["conv1_b"], np.float32)   # (10,)
    w2 = np.asarray(params["conv2_w"], np.float32)   # (20, 10, 5, 5)
    b2 = np.asarray(params["conv2_b"], np.float32)   # (20,)
    fw1 = np.asarray(params["fc1_w"], np.float32)    # (50, 320)
    fb1 = np.asarray(params["fc1_b"], np.float32)    # (50,)
    fw2 = np.asarray(params["fc2_w"], np.float32)    # (2, 50)
    fb2 = np.asarray(params["fc2_b"], np.float32)    # (2,)

    # Stage 1: T1[z*32 + w, q*256 + dw*128 + wp*10 + c] = w1[c, 0, z-q, w-(2wp+dw)]
    T1 = np.zeros((8, 32, 1024), np.float32)
    for z in range(8):
        for q in range(4):
            i = z - q
            if not (0 <= i <= 4):
                continue
            for dw in range(2):
                for wp in range(12):
                    w0 = 2 * wp + dw
                    col = q * 256 + dw * 128 + wp * 10
                    T1[z, w0:w0 + 5, col:col + 10] = w1[:, 0, i, :].T
    T1 = T1.reshape(256, 1024)
    b1t = np.zeros((1, 128), np.float32)
    b1t[0, :120] = np.tile(b1, 12)

    # Stage 2: T2[z2*128 + wp*10 + c1, dh2*256 + dw2*128 + wp2*20 + c2]
    #            = w2[c2, c1, z2-dh2, wp-(2wp2+dw2)]
    T2 = np.zeros((6, 128, 512), np.float32)
    for z2 in range(6):
        for p2 in range(2):                       # p2 == dh2
            i2 = z2 - p2
            if not (0 <= i2 <= 4):
                continue
            blk = np.transpose(w2[:, :, i2, :], (2, 1, 0)).reshape(50, 20)  # (j2*10+c1, c2)
            for dw2 in range(2):
                for wp2 in range(4):
                    w0 = 2 * wp2 + dw2
                    col = p2 * 256 + dw2 * 128 + wp2 * 20
                    T2[z2, w0 * 10:w0 * 10 + 50, col:col + 20] = blk
    T2 = T2.reshape(768, 512)
    b2t = np.zeros((1, 128), np.float32)
    b2t[0, :80] = np.tile(b2, 4)

    # FC1: PyTorch flatten is (c2, hp2, wp2); our layout is (hp2 row block, wp2*20 + c2).
    FW1 = np.zeros((4, 128, 128), np.float32)
    for r in range(4):
        idx = np.array([c2 * 16 + r * 4 + wp2 for wp2 in range(4) for c2 in range(20)])
        FW1[r, :80, :50] = fw1[:, idx].T
    FW1 = FW1.reshape(512, 128)
    FB1 = np.zeros((1, 128), np.float32)
    FB1[0, :50] = fb1

    # FC2 padded to 128x128; padded output lanes get a huge negative bias so the
    # in-kernel 128-lane softmax equals the 2-class softmax on lanes 0..1.
    FW2 = np.zeros((128, 128), np.float32)
    FW2[:50, :2] = fw2.T
    FB2 = np.full((1, 128), -1e30, np.float32)
    FB2[0, :2] = fb2

    return {
        "T1": jnp.asarray(T1, jnp.bfloat16),
        "b1t": jnp.asarray(b1t, jnp.float32),
        "T2": jnp.asarray(T2, jnp.bfloat16),
        "b2t": jnp.asarray(b2t, jnp.float32),
        "FW1": jnp.asarray(FW1, jnp.bfloat16),
        "FB1": jnp.asarray(FB1, jnp.float32),
        "FW2": jnp.asarray(FW2, jnp.bfloat16),
        "FB2": jnp.asarray(FB2, jnp.float32),
    }


# ---------------------------------------------------------------------------
# Pure-JAX reference (PyTorch semantics, eval mode) and parameter init
# ---------------------------------------------------------------------------

def reference_forward(x, params):
    def conv2d(inp, w, b):
        cout, cin, kh, kw = w.shape
        ho = inp.shape[2] - kh + 1
        wo = inp.shape[3] - kw + 1
        cols = jnp.stack([inp[:, :, i:i + ho, j:j + wo]
                          for i in range(kh) for j in range(kw)], axis=2)
        y = jnp.einsum("nckhw,ock->nohw", cols, w.reshape(cout, cin, kh * kw))
        return y + b[None, :, None, None]

    def pool2(inp):
        n_, c, h, w = inp.shape
        return inp.reshape(n_, c, h // 2, 2, w // 2, 2).max(axis=(3, 5))

    n = x.shape[0]
    y = jnp.maximum(pool2(conv2d(x, params["conv1_w"], params["conv1_b"])), 0.0)
    y = jnp.maximum(pool2(conv2d(y, params["conv2_w"], params["conv2_b"])), 0.0)
    z = y.reshape(n, 320)
    h = jnp.maximum(z @ params["fc1_w"].T + params["fc1_b"], 0.0)
    logits = h @ params["fc2_w"].T + params["fc2_b"]
    return jax.nn.softmax(logits, axis=1)


def init_params(key):
    ks = jax.random.split(key, 8)
    s = 0.1
    return {
        "conv1_w": s * jax.random.normal(ks[0], (10, 1, 5, 5), jnp.float32),
        "conv1_b": s * jax.random.normal(ks[1], (10,), jnp.float32),
        "conv2_w": s * jax.random.normal(ks[2], (20, 10, 5, 5), jnp.float32),
        "conv2_b": s * jax.random.normal(ks[3], (20,), jnp.float32),
        "fc1_w": s * jax.random.normal(ks[4], (50, 320), jnp.float32),
        "fc1_b": s * jax.random.normal(ks[5], (50,), jnp.float32),
        "fc2_w": s * jax.random.normal(ks[6], (2, 50), jnp.float32),
        "fc2_b": s * jax.random.normal(ks[7], (2,), jnp.float32),
    }


if __name__ == "__main__":
    key = jax.random.PRNGKey(0)
    k_params, k_x = jax.random.split(key)
    params = init_params(k_params)
    prep = prepare_params(params)

    # Input shape implied by view(-1, 320): (N, 1, 28, 28)
    x = jax.random.normal(k_x, (2, 1, 28, 28), jnp.float32)

    fwd = jax.jit(net_forward)
    probs = jax.block_until_ready(fwd(x, prep))

    assert probs.shape == (2, 2)
    assert bool(jnp.all(jnp.isfinite(probs)))
    # approx reciprocal in the softmax -> rows sum to 1 up to EUP approximation error
    assert bool(jnp.allclose(jnp.sum(probs, axis=1), 1.0, atol=1e-2))

    ref = reference_forward(x, params)
    err = float(jnp.max(jnp.abs(probs - ref)))
    assert err < 3e-2, f"mismatch vs pure-JAX reference: {err}"

    print("KERNEL_OK")
</pallas_src>

<mosaic_0001>
module attributes {stable_mosaic.version = 11 : i64} {
  func.func @net_kernel(%arg0: i32, %arg1: memref<96x256xbf16, #tpu.memory_space<vmem>>, %arg2: memref<256x1024xbf16, #tpu.memory_space<vmem>>, %arg3: memref<1x128xf32, #tpu.memory_space<vmem>>, %arg4: memref<768x512xbf16, #tpu.memory_space<vmem>>, %arg5: memref<1x128xf32, #tpu.memory_space<vmem>>, %arg6: memref<512x128xbf16, #tpu.memory_space<vmem>>, %arg7: memref<1x128xf32, #tpu.memory_space<vmem>>, %arg8: memref<128x128xbf16, #tpu.memory_space<vmem>>, %arg9: memref<1x128xf32, #tpu.memory_space<vmem>>, %arg10: memref<16x128xf32, #tpu.memory_space<vmem>>) attributes {dimension_semantics = [#tpu.dimension_semantics<parallel>], iteration_bounds = array<i64: 1>, scalar_prefetch = 0 : i64, scratch_operands = 0 : i64, tpu.core_type = #tpu.core_type<tc>, window_params = [{transform_indices = @transform_0, window_bounds = array<i64: 96, 256>}, {pipeline_mode = #tpu.pipeline_mode<synchronous>, transform_indices = @transform_1, window_bounds = array<i64: 256, 1024>}, {pipeline_mode = #tpu.pipeline_mode<synchronous>, transform_indices = @transform_2, window_bounds = array<i64: 1, 128>}, {pipeline_mode = #tpu.pipeline_mode<synchronous>, transform_indices = @transform_3, window_bounds = array<i64: 768, 512>}, {pipeline_mode = #tpu.pipeline_mode<synchronous>, transform_indices = @transform_4, window_bounds = array<i64: 1, 128>}, {pipeline_mode = #tpu.pipeline_mode<synchronous>, transform_indices = @transform_5, window_bounds = array<i64: 512, 128>}, {pipeline_mode = #tpu.pipeline_mode<synchronous>, transform_indices = @transform_6, window_bounds = array<i64: 1, 128>}, {pipeline_mode = #tpu.pipeline_mode<synchronous>, transform_indices = @transform_7, window_bounds = array<i64: 128, 128>}, {pipeline_mode = #tpu.pipeline_mode<synchronous>, transform_indices = @transform_8, window_bounds = array<i64: 1, 128>}, {transform_indices = @transform_9, window_bounds = array<i64: 16, 128>}]} {
    %c0 = arith.constant 0 : index
    %c0_0 = arith.constant 0 : index
    %0 = vector.load %arg1[%c0, %c0_0] : memref<96x256xbf16, #tpu.memory_space<vmem>>, vector<96x256xbf16>
    %c0_1 = arith.constant 0 : index
    %c0_2 = arith.constant 0 : index
    %1 = vector.load %arg2[%c0_1, %c0_2] : memref<256x1024xbf16, #tpu.memory_space<vmem>>, vector<256x1024xbf16>
    %cst = arith.constant dense<0.000000e+00> : vector<96x1024xf32>
    %2 = tpu.matmul %0, %1, %cst {dimension_numbers = #tpu.dot_dimension_numbers<[1], [0], [0], [1], [0, 0, 1, 1], [], []>} : vector<96x256xbf16>, vector<256x1024xbf16>, vector<96x1024xf32> -> vector<96x1024xf32>
    %3 = vector.extract_strided_slice %2 {offsets = [0, 0], sizes = [96, 256], strides = [1, 1]} : vector<96x1024xf32> to vector<96x256xf32>
    %4 = vector.extract_strided_slice %2 {offsets = [0, 256], sizes = [96, 256], strides = [1, 1]} : vector<96x1024xf32> to vector<96x256xf32>
    %5 = arith.maximumf %3, %4 : vector<96x256xf32>
    %6 = vector.extract_strided_slice %2 {offsets = [0, 512], sizes = [96, 256], strides = [1, 1]} : vector<96x1024xf32> to vector<96x256xf32>
    %7 = vector.extract_strided_slice %2 {offsets = [0, 768], sizes = [96, 256], strides = [1, 1]} : vector<96x1024xf32> to vector<96x256xf32>
    %8 = arith.maximumf %6, %7 : vector<96x256xf32>
    %c0_3 = arith.constant 0 : index
    %c0_4 = arith.constant 0 : index
    %9 = vector.load %arg3[%c0_3, %c0_4] : memref<1x128xf32, #tpu.memory_space<vmem>>, vector<1x128xf32>
    %10 = vector.extract_strided_slice %5 {offsets = [0, 0], sizes = [96, 128], strides = [1, 1]} : vector<96x256xf32> to vector<96x128xf32>
    %11 = vector.extract_strided_slice %5 {offsets = [0, 128], sizes = [96, 128], strides = [1, 1]} : vector<96x256xf32> to vector<96x128xf32>
    %12 = arith.maximumf %10, %11 : vector<96x128xf32>
    %13 = vector.broadcast %9 : vector<1x128xf32> to vector<96x128xf32>
    %14 = arith.addf %12, %13 : vector<96x128xf32>
    %cst_5 = arith.constant 0.000000e+00 : f32
    %15 = vector.broadcast %cst_5 : f32 to vector<96x128xf32>
    %16 = arith.maximumf %14, %15 : vector<96x128xf32>
    %17 = vector.extract_strided_slice %8 {offsets = [0, 0], sizes = [96, 128], strides = [1, 1]} : vector<96x256xf32> to vector<96x128xf32>
    %18 = vector.extract_strided_slice %8 {offsets = [0, 128], sizes = [96, 128], strides = [1, 1]} : vector<96x256xf32> to vector<96x128xf32>
    %19 = arith.maximumf %17, %18 : vector<96x128xf32>
    %20 = vector.broadcast %9 : vector<1x128xf32> to vector<96x128xf32>
    %21 = arith.addf %19, %20 : vector<96x128xf32>
    %cst_6 = arith.constant 0.000000e+00 : f32
    %22 = vector.broadcast %cst_6 : f32 to vector<96x128xf32>
    %23 = arith.maximumf %21, %22 : vector<96x128xf32>
    %24 = arith.truncf %16 : vector<96x128xf32> to vector<96x128xbf16>
    %25 = arith.truncf %23 : vector<96x128xf32> to vector<96x128xbf16>
    %26 = vector.extract_strided_slice %24 {offsets = [0, 0], sizes = [64, 128], strides = [1, 1]} : vector<96x128xbf16> to vector<64x128xbf16>
    %27 = vector.extract_strided_slice %25 {offsets = [0, 0], sizes = [64, 128], strides = [1, 1]} : vector<96x128xbf16> to vector<64x128xbf16>
    %28 = vector.extract_strided_slice %24 {offsets = [16, 0], sizes = [64, 128], strides = [1, 1]} : vector<96x128xbf16> to vector<64x128xbf16>
    %29 = vector.extract_strided_slice %25 {offsets = [16, 0], sizes = [64, 128], strides = [1, 1]} : vector<96x128xbf16> to vector<64x128xbf16>
    %30 = vector.extract_strided_slice %24 {offsets = [32, 0], sizes = [64, 128], strides = [1, 1]} : vector<96x128xbf16> to vector<64x128xbf16>
    %31 = vector.extract_strided_slice %25 {offsets = [32, 0], sizes = [64, 128], strides = [1, 1]} : vector<96x128xbf16> to vector<64x128xbf16>
    %32 = tpu.concatenate %26, %27, %28, %29, %30, %31 in 1 : vector<64x128xbf16>, vector<64x128xbf16>, vector<64x128xbf16>, vector<64x128xbf16>, vector<64x128xbf16>, vector<64x128xbf16> -> vector<64x768xbf16>
    %c0_7 = arith.constant 0 : index
    %c0_8 = arith.constant 0 : index
    %33 = vector.load %arg4[%c0_7, %c0_8] : memref<768x512xbf16, #tpu.memory_space<vmem>>, vector<768x512xbf16>
    %cst_9 = arith.constant dense<0.000000e+00> : vector<64x512xf32>
    %34 = tpu.matmul %32, %33, %cst_9 {dimension_numbers = #tpu.dot_dimension_numbers<[1], [0], [0], [1], [0, 0, 1, 1], [], []>} : vector<64x768xbf16>, vector<768x512xbf16>, vector<64x512xf32> -> vector<64x512xf32>
    %35 = vector.extract_strided_slice %34 {offsets = [0, 0], sizes = [64, 256], strides = [1, 1]} : vector<64x512xf32> to vector<64x256xf32>
    %36 = vector.extract_strided_slice %34 {offsets = [0, 256], sizes = [64, 256], strides = [1, 1]} : vector<64x512xf32> to vector<64x256xf32>
    %37 = arith.maximumf %35, %36 : vector<64x256xf32>
    %38 = vector.extract_strided_slice %37 {offsets = [0, 0], sizes = [64, 128], strides = [1, 1]} : vector<64x256xf32> to vector<64x128xf32>
    %39 = vector.extract_strided_slice %37 {offsets = [0, 128], sizes = [64, 128], strides = [1, 1]} : vector<64x256xf32> to vector<64x128xf32>
    %40 = arith.maximumf %38, %39 : vector<64x128xf32>
    %c0_10 = arith.constant 0 : index
    %c0_11 = arith.constant 0 : index
    %41 = vector.load %arg5[%c0_10, %c0_11] : memref<1x128xf32, #tpu.memory_space<vmem>>, vector<1x128xf32>
    %42 = vector.broadcast %41 : vector<1x128xf32> to vector<64x128xf32>
    %43 = arith.addf %40, %42 : vector<64x128xf32>
    %cst_12 = arith.constant 0.000000e+00 : f32
    %44 = vector.broadcast %cst_12 : f32 to vector<64x128xf32>
    %45 = arith.maximumf %43, %44 : vector<64x128xf32>
    %46 = arith.truncf %45 : vector<64x128xf32> to vector<64x128xbf16>
    %47 = vector.extract_strided_slice %46 {offsets = [0, 0], sizes = [16, 128], strides = [1, 1]} : vector<64x128xbf16> to vector<16x128xbf16>
    %48 = vector.extract_strided_slice %46 {offsets = [16, 0], sizes = [16, 128], strides = [1, 1]} : vector<64x128xbf16> to vector<16x128xbf16>
    %49 = vector.extract_strided_slice %46 {offsets = [32, 0], sizes = [16, 128], strides = [1, 1]} : vector<64x128xbf16> to vector<16x128xbf16>
    %50 = vector.extract_strided_slice %46 {offsets = [48, 0], sizes = [16, 128], strides = [1, 1]} : vector<64x128xbf16> to vector<16x128xbf16>
    %51 = tpu.concatenate %47, %48, %49, %50 in 1 : vector<16x128xbf16>, vector<16x128xbf16>, vector<16x128xbf16>, vector<16x128xbf16> -> vector<16x512xbf16>
    %c0_13 = arith.constant 0 : index
    %c0_14 = arith.constant 0 : index
    %52 = vector.load %arg6[%c0_13, %c0_14] : memref<512x128xbf16, #tpu.memory_space<vmem>>, vector<512x128xbf16>
    %cst_15 = arith.constant dense<0.000000e+00> : vector<16x128xf32>
    %53 = tpu.matmul %51, %52, %cst_15 {dimension_numbers = #tpu.dot_dimension_numbers<[1], [0], [0], [1], [0, 0, 1, 1], [], []>} : vector<16x512xbf16>, vector<512x128xbf16>, vector<16x128xf32> -> vector<16x128xf32>
    %c0_16 = arith.constant 0 : index
    %c0_17 = arith.constant 0 : index
    %54 = vector.load %arg7[%c0_16, %c0_17] : memref<1x128xf32, #tpu.memory_space<vmem>>, vector<1x128xf32>
    %55 = vector.broadcast %54 : vector<1x128xf32> to vector<16x128xf32>
    %56 = arith.addf %53, %55 : vector<16x128xf32>
    %cst_18 = arith.constant 0.000000e+00 : f32
    %57 = vector.broadcast %cst_18 : f32 to vector<16x128xf32>
    %58 = arith.maximumf %56, %57 : vector<16x128xf32>
    %59 = arith.truncf %58 : vector<16x128xf32> to vector<16x128xbf16>
    %c0_19 = arith.constant 0 : index
    %c0_20 = arith.constant 0 : index
    %60 = vector.load %arg8[%c0_19, %c0_20] : memref<128x128xbf16, #tpu.memory_space<vmem>>, vector<128x128xbf16>
    %cst_21 = arith.constant dense<0.000000e+00> : vector<16x128xf32>
    %61 = tpu.matmul %59, %60, %cst_21 {dimension_numbers = #tpu.dot_dimension_numbers<[1], [0], [0], [1], [0, 0, 1, 1], [], []>} : vector<16x128xbf16>, vector<128x128xbf16>, vector<16x128xf32> -> vector<16x128xf32>
    %c0_22 = arith.constant 0 : index
    %c0_23 = arith.constant 0 : index
    %62 = vector.load %arg9[%c0_22, %c0_23] : memref<1x128xf32, #tpu.memory_space<vmem>>, vector<1x128xf32>
    %63 = vector.broadcast %62 : vector<1x128xf32> to vector<16x128xf32>
    %64 = arith.addf %61, %63 : vector<16x128xf32>
    %cst_24 = arith.constant dense<0xFF800000> : vector<16xf32>
    %65 = vector.multi_reduction <maximumf>, %64, %cst_24 [1] : vector<16x128xf32> to vector<16xf32>
    %66 = vector.shape_cast %65 : vector<16xf32> to vector<16x1xf32>
    %67 = vector.broadcast %66 : vector<16x1xf32> to vector<16x128xf32>
    %68 = arith.subf %64, %67 : vector<16x128xf32>
    %69 = math.exp %68 : vector<16x128xf32>
    %cst_25 = arith.constant dense<0.000000e+00> : vector<16xf32>
    %70 = vector.multi_reduction <add>, %69, %cst_25 [1] : vector<16x128xf32> to vector<16xf32>
    %71 = vector.shape_cast %70 : vector<16xf32> to vector<16x1xf32>
    %72 = tpu.reciprocal %71 {approx = true} : vector<16x1xf32> -> vector<16x1xf32>
    %73 = vector.broadcast %72 : vector<16x1xf32> to vector<16x128xf32>
    %74 = arith.mulf %69, %73 : vector<16x128xf32>
    %c0_26 = arith.constant 0 : index
    %c0_27 = arith.constant 0 : index
    %75 = vector.load %arg10[%c0_26, %c0_27] : memref<16x128xf32, #tpu.memory_space<vmem>>, vector<16x128xf32>
    tpu.vector_store %arg10[%c0_26, %c0_27], %74 {strides = array<i32>} : memref<16x128xf32, #tpu.memory_space<vmem>>, vector<16x128xf32>,
    return
  }
  func.func @transform_0(%arg0: i32) -> (i32, i32) {
    %c0_i32 = arith.constant 0 : i32
    %c0_i32_0 = arith.constant 0 : i32
    return %arg0, %c0_i32 : i32, i32
  }
  func.func @transform_1(%arg0: i32) -> (i32, i32) {
    %c0_i32 = arith.constant 0 : i32
    %c0_i32_0 = arith.constant 0 : i32
    %c0_i32_1 = arith.constant 0 : i32
    return %c0_i32, %c0_i32_0 : i32, i32
  }
  func.func @transform_2(%arg0: i32) -> (i32, i32) {
    %c0_i32 = arith.constant 0 : i32
    %c0_i32_0 = arith.constant 0 : i32
    %c0_i32_1 = arith.constant 0 : i32
    return %c0_i32, %c0_i32_0 : i32, i32
  }
  func.func @transform_3(%arg0: i32) -> (i32, i32) {
    %c0_i32 = arith.constant 0 : i32
    %c0_i32_0 = arith.constant 0 : i32
    %c0_i32_1 = arith.constant 0 : i32
    return %c0_i32, %c0_i32_0 : i32, i32
  }
  func.func @transform_4(%arg0: i32) -> (i32, i32) {
    %c0_i32 = arith.constant 0 : i32
    %c0_i32_0 = arith.constant 0 : i32
    %c0_i32_1 = arith.constant 0 : i32
    return %c0_i32, %c0_i32_0 : i32, i32
  }
  func.func @transform_5(%arg0: i32) -> (i32, i32) {
    %c0_i32 = arith.constant 0 : i32
    %c0_i32_0 = arith.constant 0 : i32
    %c0_i32_1 = arith.constant 0 : i32
    return %c0_i32, %c0_i32_0 : i32, i32
  }
  func.func @transform_6(%arg0: i32) -> (i32, i32) {
    %c0_i32 = arith.constant 0 : i32
    %c0_i32_0 = arith.constant 0 : i32
    %c0_i32_1 = arith.constant 0 : i32
    return %c0_i32, %c0_i32_0 : i32, i32
  }
  func.func @transform_7(%arg0: i32) -> (i32, i32) {
    %c0_i32 = arith.constant 0 : i32
    %c0_i32_0 = arith.constant 0 : i32
    %c0_i32_1 = arith.constant 0 : i32
    return %c0_i32, %c0_i32_0 : i32, i32
  }
  func.func @transform_8(%arg0: i32) -> (i32, i32) {
    %c0_i32 = arith.constant 0 : i32
    %c0_i32_0 = arith.constant 0 : i32
    %c0_i32_1 = arith.constant 0 : i32
    return %c0_i32, %c0_i32_0 : i32, i32
  }
  func.func @transform_9(%arg0: i32) -> (i32, i32) {
    %c0_i32 = arith.constant 0 : i32
    %c0_i32_0 = arith.constant 0 : i32
    return %arg0, %c0_i32 : i32, i32
  }
}

</mosaic_0001>

<bundles_post_ra>
// kernel: net_forward.1
= control target key start
LH: loop header
LB: loop body
LE: loop exit
PB: predicated region body
PF: predicated region fallthrough
CT: control target
= control target key end

     0   :  { %14 = vsyncpa [#allocation3], 0  ;;  %s5739_s0 = inlined_call_operand.vmem [shape: bf16[96,256], index: 0, kind: input, shape index: {}]   ;;  %s5740_s1 = inlined_call_operand.vmem [shape: bf16[256,1024], index: 1, kind: input, shape index: {}]   ;;  %s5741_s2 = inlined_call_operand.vmem [shape: f32[1,128], index: 2, kind: input, shape index: {}]   ;;  %s5742_s3 = inlined_call_operand.vmem [shape: bf16[768,512], index: 3, kind: input, shape index: {}]   ;;  %s5743_s4 = inlined_call_operand.vmem [shape: f32[1,128], index: 4, kind: input, shape index: {}]   ;;  %s5744_s5 = inlined_call_operand.hbm [shape: bf16[512,128], index: 5, kind: input, shape index: {}]   ;;  %s5745_s6 = inlined_call_operand.vmem [shape: f32[1,128], index: 6, kind: input, shape index: {}]   ;;  %s5746_s7 = inlined_call_operand.hbm [shape: bf16[128,128], index: 7, kind: input, shape index: {}]   ;;  %s5747_s8 = inlined_call_operand.vmem [shape: f32[1,128], index: 8, kind: input, shape index: {}]   ;;  %s5748_s9 = inlined_call_operand.vmem [shape: f32[16,128], index: 9, kind: output, shape index: {}]  }
   0x1   :  { %15 = vsyncpa [#allocation5], 0  ;;  %s4460_s30 = smov [#allocation2]   ;;  %s4412_s13 = scalar_lea.hbm %s5744_s5, 4096 }
   0x2   :  { %s31_s10 = sshll.u32 %s4460_s30, 4  ;;  %p4413_p0 = scmp.ne.s32.totalorder %s5744_s5, %s4412_s13  ;;  %s32_s10 = int_to_ptr.vmem [resolvable:$true] %s31_s10 }
   0x3   :  { %p4416_p1 = scmp.lt.u32.totalorder %s4412_s13, %s5744_s5 }
   0x5   :  { %p4418_p2 = pnand %p4416_p1, %p4413_p0 }
   0x7   :  { %4421 = shalt.err (!%p4418_p2)
}
   0x8   :  { %s4422_s18 = scalar_lea.vmem %s32_s10, 4096  ;;  %p4427_p4 = scmp.lt.s32.totalorder %s32_s10, %s32_s10 }
   0x9   :  { %p4423_p3 = scmp.ne.s32.totalorder %s32_s10, %s4422_s18  ;;  %p4428_p5 = scmp.lt.s32.totalorder %s4422_s18, %s4422_s18 }
   0xb   :  { %p4429_p6 = por %p4428_p5, %p4427_p4 }
   0xd   :  { %p4430_p7 = pnand %p4429_p6, %p4423_p3 }
   0xf   :  { %4433 = shalt.err (!%p4430_p7)
}
  0x10   :  { %s4461_s19 = smov 64   ;;  %s4462_s20 = smov 4  }
  0x11   :  { %37 = dma.hbm_to_vmem [thread:$0]  %s5744_s5, 4096, %s32_s10, [#allocation3], %s4461_s19, %s4461_s19, %s4462_s20  }
  0x12   :  { %s4463_s23 = smov [#allocation4]   ;;  %s4434_s27 = scalar_lea.hbm %s5746_s7, 1024 }
  0x13   :  { %s45_s24 = sshll.u32 %s4463_s23, 4  ;;  %p4435_p8 = scmp.ne.s32.totalorder %s5746_s7, %s4434_s27  ;;  %s46_s24 = int_to_ptr.vmem [resolvable:$true] %s45_s24 }
  0x14   :  { %p4438_p9 = scmp.lt.u32.totalorder %s4434_s27, %s5746_s7 }
  0x16   :  { %p4440_p10 = pnand %p4438_p9, %p4435_p8 }
  0x18   :  { %4443 = shalt.err (!%p4440_p10)
}
  0x19   :  { %s4444_s12 = scalar_lea.vmem %s46_s24, 1024  ;;  %p4449_p12 = scmp.lt.s32.totalorder %s46_s24, %s46_s24 }
  0x1a   :  { %p4445_p11 = scmp.ne.s32.totalorder %s46_s24, %s4444_s12  ;;  %p4450_p13 = scmp.lt.s32.totalorder %s4444_s12, %s4444_s12 }
  0x1c   :  { %p4451_p0 = por %p4450_p13, %p4449_p12 }
  0x1e   :  { %p4452_p1 = pnand %p4451_p0, %p4445_p11 }
  0x20   :  { %4455 = shalt.err (!%p4452_p1)
}
  0x21   :  { %51 = dma.hbm_to_vmem [thread:$0]  %s5746_s7, 1024, %s46_s24, [#allocation5], %s4461_s19, %s4461_s19, %s4462_s20  }
  0x22   :  { %4456 = dma.done.wait [#allocation3], 4096  }
  0x23   :  { %4457 = vsyncadd [#allocation3], 4294963200 }
  0x24   :  { %4458 = dma.done.wait [#allocation5], 1024  }
  0x25   :  { %4459 = vsyncadd [#allocation5], 4294966272  ;;  %v73_v0 = vld [vmem:[%s5740_s1] sm:$0xff]  ;;  %v74_v2 = vld [vmem:[%s5740_s1 + $0x8] sm:$0xff]  ;;  %vm4465_vm0 = vmmov 0  }
  0x26   :  { %v77_v1 = vld [vmem:[%s5740_s1 + $0x20] sm:$0xff]  ;;  %v78_v4 = vld [vmem:[%s5740_s1 + $0x28] sm:$0xff] }
  0x27   :  { %v3552_v3 = vcombine.high %v73_v0, %v77_v1  ;;  %v3551_v5 = vcombine.low %v73_v0, %v77_v1  ;;  %v81_v6 = vld [vmem:[%s5740_s1 + $0x40] sm:$0xff]  ;;  %v3554_v8 = vcombine.high %v74_v2, %v78_v4  ;;  %v3553_v9 = vcombine.low %v74_v2, %v78_v4  ;;  %v82_v11 = vld [vmem:[%s5740_s1 + $0x48] sm:$0xff] }
  0x28   :  { %v85_v7 = vld [vmem:[%s5740_s1 + $0x60] sm:$0xff]  ;;  %v86_v12 = vld [vmem:[%s5740_s1 + $0x68] sm:$0xff] }
  0x29   :  { %v3560_v10 = vcombine.high %v81_v6, %v85_v7  ;;  %v89_v13 = vld [vmem:[%s5740_s1 + $0x80] sm:$0xff]  ;;  %901 = vmatprep.subr.bf16.mxu0 %v3552_v3  ;;  %v3562_v14 = vcombine.high %v82_v11, %v86_v12  ;;  %v90_v16 = vld [vmem:[%s5740_s1 + $0x88] sm:$0xff]  ;;  %994 = vmatprep.subr.bf16.mxu1 %v3554_v8  ;;  %v3559_v18 = vcombine.low %v81_v6, %v85_v7 }
  0x2a   :  { %v93_v15 = vld [vmem:[%s5740_s1 + $0xa0] sm:$0xff]  ;;  %v94_v17 = vld [vmem:[%s5740_s1 + $0xa8] sm:$0xff]  ;;  %902 = vmatpush1.bf16.msra.mxu0 %v3551_v5  ;;  %995 = vmatpush1.bf16.msra.mxu1 %v3553_v9  ;;  %v3561_v19 = vcombine.low %v82_v11, %v86_v12 }
  0x2b   :  { %903 = vmatprep.subr.bf16.mxu0 %v3560_v10  ;;  %v3568_v20 = vcombine.high %v89_v13, %v93_v15  ;;  %996 = vmatprep.subr.bf16.mxu1 %v3562_v14  ;;  %v3570_v21 = vcombine.high %v90_v16, %v94_v17  ;;  %v97_v22 = vld [vmem:[%s5740_s1 + $0xc0] sm:$0xff]  ;;  %v98_v24 = vld [vmem:[%s5740_s1 + $0xc8] sm:$0xff]  ;;  %v3567_v26 = vcombine.low %v89_v13, %v93_v15 }
  0x2c   :  { %v101_v23 = vld [vmem:[%s5740_s1 + $0xe0] sm:$0xff]  ;;  %v102_v25 = vld [vmem:[%s5740_s1 + $0xe8] sm:$0xff]  ;;  %v3569_v27 = vcombine.low %v90_v16, %v94_v17 }
  0x2d   :  { %v3576_v28 = vcombine.high %v97_v22, %v101_v23  ;;  %v3578_v29 = vcombine.high %v98_v24, %v102_v25  ;;  %v105_v30 = vld [vmem:[%s5740_s1 + $0x100] sm:$0xff]  ;;  %v106_v32 = vld [vmem:[%s5740_s1 + $0x108] sm:$0xff]  ;;  %v3575_v34 = vcombine.low %v97_v22, %v101_v23  ;;  %v3577_v35 = vcombine.low %v98_v24, %v102_v25 }
  0x2e   :  { %904 = vmatpush1.bf16.msra.mxu0 %v3559_v18  ;;  %997 = vmatpush1.bf16.msra.mxu1 %v3561_v19  ;;  %v109_v31 = vld [vmem:[%s5740_s1 + $0x120] sm:$0xff]  ;;  %v110_v33 = vld [vmem:[%s5740_s1 + $0x128] sm:$0xff] }
  0x2f   :  { %905 = vmatprep.subr.bf16.mxu0 %v3568_v20  ;;  %998 = vmatprep.subr.bf16.mxu1 %v3570_v21  ;;  %v3584_v36 = vcombine.high %v105_v30, %v109_v31  ;;  %v3586_v37 = vcombine.high %v106_v32, %v110_v33  ;;  %v113_v38 = vld [vmem:[%s5740_s1 + $0x140] sm:$0xff]  ;;  %v114_v40 = vld [vmem:[%s5740_s1 + $0x148] sm:$0xff]  ;;  %v3583_v42 = vcombine.low %v105_v30, %v109_v31 }
  0x30   :  { %v117_v39 = vld [vmem:[%s5740_s1 + $0x160] sm:$0xff]  ;;  %v118_v41 = vld [vmem:[%s5740_s1 + $0x168] sm:$0xff]  ;;  %v3585_v43 = vcombine.low %v106_v32, %v110_v33 }
  0x31   :  { %v3592_v44 = vcombine.high %v113_v38, %v117_v39  ;;  %v3594_v45 = vcombine.high %v114_v40, %v118_v41  ;;  %v121_v46 = vld [vmem:[%s5740_s1 + $0x180] sm:$0xff]  ;;  %v122_v48 = vld [vmem:[%s5740_s1 + $0x188] sm:$0xff]  ;;  %v3591_v50 = vcombine.low %v113_v38, %v117_v39  ;;  %v3593_v51 = vcombine.low %v114_v40, %v118_v41 }
  0x32   :  { %906 = vmatpush1.bf16.msra.mxu0 %v3567_v26  ;;  %999 = vmatpush1.bf16.msra.mxu1 %v3569_v27  ;;  %v125_v47 = vld [vmem:[%s5740_s1 + $0x1a0] sm:$0xff]  ;;  %v126_v49 = vld [vmem:[%s5740_s1 + $0x1a8] sm:$0xff] }
  0x33   :  { %907 = vmatprep.subr.bf16.mxu0 %v3576_v28  ;;  %1000 = vmatprep.subr.bf16.mxu1 %v3578_v29  ;;  %v3600_v52 = vcombine.high %v121_v46, %v125_v47  ;;  %v3602_v53 = vcombine.high %v122_v48, %v126_v49  ;;  %v129_v54 = vld [vmem:[%s5740_s1 + $0x1c0] sm:$0xff]  ;;  %v130_v57 = vld [vmem:[%s5740_s1 + $0x1c8] sm:$0xff]  ;;  %v3599_v59 = vcombine.low %v121_v46, %v125_v47 }
  0x34   :  { %v133_v55 = vld [vmem:[%s5740_s1 + $0x1e0] sm:$0xff]  ;;  %v134_v58 = vld [vmem:[%s5740_s1 + $0x1e8] sm:$0xff]  ;;  %v3601_v60 = vcombine.low %v122_v48, %v126_v49 }
  0x35   :  { %v4633_v56 = vld [vmem:[%s5739_s0 + $0x4] ss:$8 sps:$4 sm:$0xff]   ;;  %v3608_v61 = vcombine.high %v129_v54, %v133_v55  ;;  %v3610_v62 = vcombine.high %v130_v57, %v134_v58  ;;  %v3607_v3 = vcombine.low %v129_v54, %v133_v55  ;;  %v3609_v4 = vcombine.low %v130_v57, %v134_v58 }
  0x36   :  { %908 = vmatpush1.bf16.msra.mxu0 %v3575_v34  ;;  %1001 = vmatpush1.bf16.msra.mxu1 %v3577_v35  ;;  %v137_v63 = vld [vmem:[%s5740_s1 + $0x200] sm:$0xff]  ;;  %v138_v1 = vld [vmem:[%s5740_s1 + $0x208] sm:$0xff] }
  0x37   :  { %909 = vmatprep.subr.bf16.mxu0 %v3584_v36  ;;  %1002 = vmatprep.subr.bf16.mxu1 %v3586_v37  ;;  %v141_v0 = vld [vmem:[%s5740_s1 + $0x220] sm:$0xff]  ;;  %v142_v2 = vld [vmem:[%s5740_s1 + $0x228] sm:$0xff] }
  0x38   :  { %933 = vmatprep.mubr.bf16.mxu0 %v4633_v56  ;;  %1026 = vmatprep.mubr.bf16.mxu1 %v4633_v56  ;;  %v3616_v5 = vcombine.high %v137_v63, %v141_v0  ;;  %v3618_v6 = vcombine.high %v138_v1, %v142_v2  ;;  %v145_v7 = vld [vmem:[%s5740_s1 + $0x240] sm:$0xff]  ;;  %v146_v9 = vld [vmem:[%s5740_s1 + $0x248] sm:$0xff]  ;;  %v3615_v11 = vcombine.low %v137_v63, %v141_v0 }
  0x39   :  { %v149_v8 = vld [vmem:[%s5740_s1 + $0x260] sm:$0xff]  ;;  %v150_v10 = vld [vmem:[%s5740_s1 + $0x268] sm:$0xff]  ;;  %v3617_v12 = vcombine.low %v138_v1, %v142_v2  ;;  %v76_v1 = vld [vmem:[%s5740_s1 + $0x18] sm:$0xff] }
  0x3a   :  { %910 = vmatpush1.bf16.msra.mxu0 %v3583_v42  ;;  %1003 = vmatpush1.bf16.msra.mxu1 %v3585_v43  ;;  %v3624_v13 = vcombine.high %v145_v7, %v149_v8  ;;  %v3626_v14 = vcombine.high %v146_v9, %v150_v10  ;;  %v153_v15 = vld [vmem:[%s5740_s1 + $0x280] sm:$0xff]  ;;  %v154_v17 = vld [vmem:[%s5740_s1 + $0x288] sm:$0xff]  ;;  %v3623_v19 = vcombine.low %v145_v7, %v149_v8  ;;  %v80_v2 = vld [vmem:[%s5740_s1 + $0x38] sm:$0xff] }
  0x3b   :  { %911 = vmatprep.subr.bf16.mxu0 %v3592_v44  ;;  %1004 = vmatprep.subr.bf16.mxu1 %v3594_v45  ;;  %v157_v16 = vld [vmem:[%s5740_s1 + $0x2a0] sm:$0xff]  ;;  %v158_v18 = vld [vmem:[%s5740_s1 + $0x2a8] sm:$0xff]  ;;  %v3625_v20 = vcombine.low %v146_v9, %v150_v10  ;;  %v84_v10 = vld [vmem:[%s5740_s1 + $0x58] sm:$0xff] }
  0x3c   :  { %v3632_v21 = vcombine.high %v153_v15, %v157_v16  ;;  %v3634_v22 = vcombine.high %v154_v17, %v158_v18  ;;  %v161_v23 = vld [vmem:[%s5740_s1 + $0x2c0] sm:$0xff]  ;;  %v162_v25 = vld [vmem:[%s5740_s1 + $0x2c8] sm:$0xff]  ;;  %v3631_v27 = vcombine.low %v153_v15, %v157_v16  ;;  %v3633_v28 = vcombine.low %v154_v17, %v158_v18  ;;  %v95_v15 = vld [vmem:[%s5740_s1 + $0xb0] sm:$0xff] }
  0x3d   :  { %v165_v24 = vld [vmem:[%s5740_s1 + $0x2e0] sm:$0xff]  ;;  %v166_v26 = vld [vmem:[%s5740_s1 + $0x2e8] sm:$0xff]  ;;  %v4777_v16 = vld [vmem:[%s5739_s0 + $0x14] ss:$8 sps:$4 sm:$0xff]   ;;  %v3557_v17 = vcombine.low %v76_v1, %v80_v2 }
  0x3e   :  { %912 = vmatpush1.bf16.msra.mxu0 %v3591_v50  ;;  %1005 = vmatpush1.bf16.msra.mxu1 %v3593_v51  ;;  %v3640_v29 = vcombine.high %v161_v23, %v165_v24  ;;  %v3642_v30 = vcombine.high %v162_v25, %v166_v26  ;;  %v169_v31 = vld [vmem:[%s5740_s1 + $0x300] sm:$0xff]  ;;  %v170_v33 = vld [vmem:[%s5740_s1 + $0x308] sm:$0xff]  ;;  %v3639_v35 = vcombine.low %v161_v23, %v165_v24  ;;  %v99_v23 = vld [vmem:[%s5740_s1 + $0xd0] sm:$0xff] }
  0x3f   :  { %913 = vmatprep.subr.bf16.mxu0 %v3600_v52  ;;  %1006 = vmatprep.subr.bf16.mxu1 %v3602_v53  ;;  %v173_v32 = vld [vmem:[%s5740_s1 + $0x320] sm:$0xff]  ;;  %v174_v34 = vld [vmem:[%s5740_s1 + $0x328] sm:$0xff]  ;;  %v3641_v36 = vcombine.low %v162_v25, %v166_v26  ;;  %v103_v24 = vld [vmem:[%s5740_s1 + $0xf0] sm:$0xff] }
  0x40   :  { %v3648_v37 = vcombine.high %v169_v31, %v173_v32  ;;  %v3650_v38 = vcombine.high %v170_v33, %v174_v34  ;;  %v177_v39 = vld [vmem:[%s5740_s1 + $0x340] sm:$0xff]  ;;  %v178_v41 = vld [vmem:[%s5740_s1 + $0x348] sm:$0xff]  ;;  %v3647_v43 = vcombine.low %v169_v31, %v173_v32  ;;  %v3649_v44 = vcombine.low %v170_v33, %v174_v34  ;;  %v107_v32 = vld [vmem:[%s5740_s1 + $0x110] sm:$0xff] }
  0x41   :  { %v181_v40 = vld [vmem:[%s5740_s1 + $0x360] sm:$0xff]  ;;  %v182_v42 = vld [vmem:[%s5740_s1 + $0x368] sm:$0xff]  ;;  %v111_v33 = vld [vmem:[%s5740_s1 + $0x130] sm:$0xff] }
  0x42   :  { %914 = vmatpush1.bf16.msra.mxu0 %v3599_v59  ;;  %1007 = vmatpush1.bf16.msra.mxu1 %v3601_v60  ;;  %v3656_v45 = vcombine.high %v177_v39, %v181_v40  ;;  %v185_v46 = vld [vmem:[%s5740_s1 + $0x380] sm:$0xff]  ;;  %v3658_v48 = vcombine.high %v178_v41, %v182_v42  ;;  %v186_v49 = vld [vmem:[%s5740_s1 + $0x388] sm:$0xff]  ;;  %v3655_v51 = vcombine.low %v177_v39, %v181_v40 }
  0x43   :  { %915 = vmatprep.subr.bf16.mxu0 %v3608_v61  ;;  %1008 = vmatprep.subr.bf16.mxu1 %v3610_v62  ;;  %v189_v47 = vld [vmem:[%s5740_s1 + $0x3a0] sm:$0xff]  ;;  %v190_v50 = vld [vmem:[%s5740_s1 + $0x3a8] sm:$0xff]  ;;  %v3657_v54 = vcombine.low %v178_v41, %v182_v42  ;;  %v75_v61 = vld [vmem:[%s5740_s1 + $0x10] sm:$0xff]  ;;  %v3579_v40 = vcombine.low %v99_v23, %v103_v24 }
  0x44   :  { %v193_v52 = vld [vmem:[%s5740_s1 + $0x3c0] sm:$0xff]  ;;  %v3664_v55 = vcombine.high %v185_v46, %v189_v47  ;;  %v194_v57 = vld [vmem:[%s5740_s1 + $0x3c8] sm:$0xff]  ;;  %v3666_v59 = vcombine.high %v186_v49, %v190_v50  ;;  %v3663_v60 = vcombine.low %v185_v46, %v189_v47  ;;  %v79_v62 = vld [vmem:[%s5740_s1 + $0x30] sm:$0xff]  ;;  %v3665_v63 = vcombine.low %v186_v49, %v190_v50 }
  0x45   :  { %v197_v53 = vld [vmem:[%s5740_s1 + $0x3e0] sm:$0xff]  ;;  %v198_v58 = vld [vmem:[%s5740_s1 + $0x3e8] sm:$0xff]  ;;  %v3556_v9 = vcombine.high %v75_v61, %v79_v62  ;;  %v115_v41 = vld [vmem:[%s5740_s1 + $0x150] sm:$0xff]  ;;  %v3587_v49 = vcombine.low %v107_v32, %v111_v33 }
  0x46   :  { %916 = vmatpush1.bf16.msra.mxu0 %v3607_v3  ;;  %1009 = vmatpush1.bf16.msra.mxu1 %v3609_v4  ;;  %v3672_v0 = vcombine.high %v193_v52, %v197_v53  ;;  %v3674_v3 = vcombine.high %v194_v57, %v198_v58  ;;  %v3671_v4 = vcombine.low %v193_v52, %v197_v53  ;;  %v4760_v8 = vld [vmem:[%s5739_s0] ss:$8 sps:$4 sm:$0xff]   ;;  %v4815_v34 = vld [vmem:[%s5739_s0 + $0x24] ss:$8 sps:$4 sm:$0xff]   ;;  %v119_v42 = vld [vmem:[%s5740_s1 + $0x170] sm:$0xff] }
  0x47   :  { %917 = vmatprep.subr.bf16.mxu0 %v3616_v5  ;;  %1010 = vmatprep.subr.bf16.mxu1 %v3618_v6  ;;  %v83_v5 = vld [vmem:[%s5740_s1 + $0x50] sm:$0xff]  ;;  %v3673_v7 = vcombine.low %v194_v57, %v198_v58  ;;  %v120_v46 = vld [vmem:[%s5740_s1 + $0x178] sm:$0xff]  ;;  %v4840_v47 = vld [vmem:[%s5739_s0 + $0x20] ss:$8 sps:$4 sm:$0xff]  }
  0x48   :  { %v87_v6 = vld [vmem:[%s5740_s1 + $0x70] sm:$0xff]  ;;  %v128_v57 = vld [vmem:[%s5740_s1 + $0x1b8] sm:$0xff] }
  0x49   :  { %v3564_v18 = vcombine.high %v83_v5, %v87_v6  ;;  %v123_v50 = vld [vmem:[%s5740_s1 + $0x190] sm:$0xff] }
  0x4a   :  { %918 = vmatpush1.bf16.msra.mxu0 %v3615_v11  ;;  %1011 = vmatpush1.bf16.msra.mxu1 %v3617_v12  ;;  %v88_v11 = vld [vmem:[%s5740_s1 + $0x78] sm:$0xff]  ;;  %v3558_v12 = vcombine.high %v76_v1, %v80_v2 }
  0x4b   :  { %919 = vmatprep.subr.bf16.mxu0 %v3624_v13  ;;  %1012 = vmatprep.subr.bf16.mxu1 %v3626_v14  ;;  %v3555_v13 = vcombine.low %v75_v61, %v79_v62  ;;  %v91_v14 = vld [vmem:[%s5740_s1 + $0x90] sm:$0xff]  ;;  %v3565_v25 = vcombine.low %v84_v10, %v88_v11  ;;  %v136_v1 = vld [vmem:[%s5740_s1 + $0x1f8] sm:$0xff] }
  0x4c   :  { %v3572_v26 = vcombine.high %v91_v14, %v95_v15  ;;  %v3571_v31 = vcombine.low %v91_v14, %v95_v15  ;;  %v4853_v52 = vld [vmem:[%s5739_s0 + $0x34] ss:$8 sps:$4 sm:$0xff]   ;;  %v4878_v2 = vld [vmem:[%s5739_s0 + $0x30] ss:$8 sps:$4 sm:$0xff]  }
  0x4d   :  { %v135_v61 = vld [vmem:[%s5740_s1 + $0x1f0] sm:$0xff] }
  0x4e   :  { %920 = vmatpush1.bf16.msra.mxu0 %v3623_v19  ;;  %1013 = vmatpush1.bf16.msra.mxu1 %v3625_v20  ;;  %v92_v19 = vld [vmem:[%s5740_s1 + $0x98] sm:$0xff]  ;;  %v147_v15 = vld [vmem:[%s5740_s1 + $0x250] sm:$0xff] }
  0x4f   :  { %921 = vmatprep.subr.bf16.mxu0 %v3632_v21  ;;  %1014 = vmatprep.subr.bf16.mxu1 %v3634_v22  ;;  %v96_v20 = vld [vmem:[%s5740_s1 + $0xb8] sm:$0xff]  ;;  %v3566_v21 = vcombine.high %v84_v10, %v88_v11  ;;  %v3563_v22 = vcombine.low %v83_v5, %v87_v6  ;;  %v139_v5 = vld [vmem:[%s5740_s1 + $0x210] sm:$0xff] }
  0x50   :  { %v143_v6 = vld [vmem:[%s5740_s1 + $0x230] sm:$0xff]  ;;  %v140_v11 = vld [vmem:[%s5740_s1 + $0x218] sm:$0xff] }
  0x52   :  { %922 = vmatpush1.bf16.msra.mxu0 %v3631_v27  ;;  %1015 = vmatpush1.bf16.msra.mxu1 %v3633_v28  ;;  %v100_v27 = vld [vmem:[%s5740_s1 + $0xd8] sm:$0xff] }
  0x53   :  { %923 = vmatprep.subr.bf16.mxu0 %v3640_v29  ;;  %1016 = vmatprep.subr.bf16.mxu1 %v3642_v30  ;;  %v104_v28 = vld [vmem:[%s5740_s1 + $0xf8] sm:$0xff]  ;;  %v3574_v30 = vcombine.high %v92_v19, %v96_v20 }
  0x54   :  { %v4802_v29 = vld [vmem:[%s5739_s0 + $0x10] ss:$8 sps:$4 sm:$0xff]   ;;  %v3582_v39 = vcombine.high %v100_v27, %v104_v28 }
  0x56   :  { %924 = vmatpush1.bf16.msra.mxu0 %v3639_v35  ;;  %1017 = vmatpush1.bf16.msra.mxu1 %v3641_v36  ;;  %v3573_v35 = vcombine.low %v92_v19, %v96_v20  ;;  %v3580_v36 = vcombine.high %v99_v23, %v103_v24  ;;  %v3620_v19 = vcombine.high %v139_v5, %v143_v6  ;;  %v148_v20 = vld [vmem:[%s5740_s1 + $0x258] sm:$0xff] }
  0x57   :  { %925 = vmatprep.subr.bf16.mxu0 %v3648_v37  ;;  %1018 = vmatprep.subr.bf16.mxu1 %v3650_v38  ;;  %v108_v37 = vld [vmem:[%s5740_s1 + $0x118] sm:$0xff]  ;;  %v3619_v24 = vcombine.low %v139_v5, %v143_v6 }
  0x58   :  { %v112_v38 = vld [vmem:[%s5740_s1 + $0x138] sm:$0xff] }
  0x59   :  { %v3589_v53 = vcombine.low %v108_v37, %v112_v38  ;;  %v188_v5 = vld [vmem:[%s5740_s1 + $0x398] sm:$0xff] }
  0x5a   :  { %926 = vmatpush1.bf16.msra.mxu0 %v3647_v43  ;;  %1019 = vmatpush1.bf16.msra.mxu1 %v3649_v44  ;;  %v3581_v43 = vcombine.low %v100_v27, %v104_v28  ;;  %v3588_v44 = vcombine.high %v107_v32, %v111_v33  ;;  %v4929_v27 = vld [vmem:[%s5739_s0 + $0x54] ss:$8 sps:$4 sm:$0xff]  }
  0x5b   :  { %927 = vmatprep.subr.bf16.mxu0 %v3656_v45  ;;  %1020 = vmatprep.subr.bf16.mxu1 %v3658_v48  ;;  %v116_v45 = vld [vmem:[%s5740_s1 + $0x158] sm:$0xff]  ;;  %v3590_v48 = vcombine.high %v108_v37, %v112_v38  ;;  %v167_v37 = vld [vmem:[%s5740_s1 + $0x2f0] sm:$0xff] }
  0x5c   :  { %v3598_v58 = vcombine.high %v116_v45, %v120_v46  ;;  %v3597_v62 = vcombine.low %v116_v45, %v120_v46  ;;  %v160_v32 = vld [vmem:[%s5740_s1 + $0x2b8] sm:$0xff]  ;;  %v171_v45 = vld [vmem:[%s5740_s1 + $0x310] sm:$0xff] }
  0x5d   :  { %v175_v46 = vld [vmem:[%s5740_s1 + $0x330] sm:$0xff] }
  0x5e   :  { %928 = vmatpush1.bf16.msra.mxu0 %v3655_v51  ;;  %1021 = vmatpush1.bf16.msra.mxu1 %v3657_v54  ;;  %v127_v51 = vld [vmem:[%s5740_s1 + $0x1b0] sm:$0xff]  ;;  %v3596_v54 = vcombine.high %v115_v41, %v119_v42 }
  0x5f   :  { %929 = vmatprep.subr.bf16.mxu0 %v3664_v55  ;;  %1022 = vmatprep.subr.bf16.mxu1 %v3666_v59  ;;  %v124_v55 = vld [vmem:[%s5740_s1 + $0x198] sm:$0xff]  ;;  %v3595_v59 = vcombine.low %v115_v41, %v119_v42 }
  0x60   :  { %v168_v41 = vld [vmem:[%s5740_s1 + $0x2f8] sm:$0xff] }
  0x61   :  { %v4954_v42 = vld [vmem:[%s5739_s0 + $0x50] ss:$8 sps:$4 sm:$0xff]  }
  0x62   :  { %930 = vmatpush1.bf16.msra.mxu0 %v3663_v60  ;;  %1023 = vmatpush1.bf16.msra.mxu1 %v3665_v63  ;;  %v131_v60 = vld [vmem:[%s5740_s1 + $0x1d0] sm:$0xff]  ;;  %v3604_v63 = vcombine.high %v123_v50, %v127_v51 }
  0x63   :  { %931 = vmatprep.subr.bf16.mxu0 %v3672_v0  ;;  %1024 = vmatprep.subr.bf16.mxu1 %v3674_v3  ;;  %v132_v0 = vld [vmem:[%s5740_s1 + $0x1d8] sm:$0xff]  ;;  %v3606_v3 = vcombine.high %v124_v55, %v128_v57  ;;  %v3612_v10 = vcombine.high %v131_v60, %v135_v61  ;;  %v3611_v14 = vcombine.low %v131_v60, %v135_v61 }
  0x64   :  { %v180_v60 = vld [vmem:[%s5740_s1 + $0x358] sm:$0xff] }
  0x65   :  { %v184_v61 = vld [vmem:[%s5740_s1 + $0x378] sm:$0xff] }
  0x66   :  { %932 = vmatpush1.bf16.msra.mxu0 %v3671_v4  ;;  %1025 = vmatpush1.bf16.msra.mxu1 %v3673_v7  ;;  %v3603_v4 = vcombine.low %v123_v50, %v127_v51  ;;  %v4891_v7 = vld [vmem:[%s5739_s0 + $0x44] ss:$8 sps:$4 sm:$0xff]   ;;  %v172_v50 = vld [vmem:[%s5740_s1 + $0x318] sm:$0xff]  ;;  %v3662_v6 = vcombine.high %v180_v60, %v184_v61 }
  0x67   :  { %1087 = vmatprep.subr.bf16.mxu0 %v3556_v9  ;;  %1180 = vmatprep.subr.bf16.mxu1 %v3558_v12  ;;  %v3605_v9 = vcombine.low %v124_v55, %v128_v57  ;;  %v144_v12 = vld [vmem:[%s5740_s1 + $0x238] sm:$0xff]  ;;  %v179_v55 = vld [vmem:[%s5740_s1 + $0x350] sm:$0xff] }
  0x68   :  { %v3622_v23 = vcombine.high %v140_v11, %v144_v12  ;;  %v3621_v28 = vcombine.low %v140_v11, %v144_v12  ;;  %v176_v51 = vld [vmem:[%s5740_s1 + $0x338] sm:$0xff]  ;;  %v183_v57 = vld [vmem:[%s5740_s1 + $0x370] sm:$0xff]  ;;  %v3661_v12 = vcombine.low %v180_v60, %v184_v61 }
  0x69   :  { %934 = vmatmul.mubr.bf16.vlgmr.msra.gmra.mrb[0].mxu0 %v4760_v8  ;;  %1027 = vmatmul.mubr.bf16.vlgmr.msra.gmra.mrb[0].mxu1 %v4760_v8  ;;  %v199_v11 = vld [vmem:[%s5740_s1 + $0x3f0] sm:$0xff]  ;;  %v4133_v60 = vld [vmem:[%s5742_s3 + $0x128] ss:$16 sps:$4 sm:$0xff]  }
  0x6a   :  { %1088 = vmatpush1.bf16.msra.mxu0 %v3555_v13  ;;  %1181 = vmatpush1.bf16.msra.mxu1 %v3557_v17  ;;  %v3614_v13 = vcombine.high %v132_v0, %v136_v1  ;;  %v151_v17 = vld [vmem:[%s5740_s1 + $0x270] sm:$0xff] }
  0x6b   :  { %1089 = vmatprep.subr.bf16.mxu0 %v3564_v18  ;;  %1182 = vmatprep.subr.bf16.mxu1 %v3566_v21  ;;  %v3613_v18 = vcombine.low %v132_v0, %v136_v1  ;;  %v152_v21 = vld [vmem:[%s5740_s1 + $0x278] sm:$0xff]  ;;  %v187_v0 = vld [vmem:[%s5740_s1 + $0x390] sm:$0xff] }
  0x6c   :  { %943 = vmatprep.mubr.bf16.mxu0 %v4777_v16  ;;  %1036 = vmatprep.mubr.bf16.mxu1 %v4777_v16  ;;  %v3630_v33 = vcombine.high %v148_v20, %v152_v21  ;;  %v3629_v38 = vcombine.low %v148_v20, %v152_v21  ;;  %v191_v1 = vld [vmem:[%s5740_s1 + $0x3b0] sm:$0xff] }
  0x6d   :  { %v4138_v61 = vld [vmem:[%s5742_s3 + $0x144] ss:$16 sps:$4 sm:$0xff]  }
  0x6e   :  { %1090 = vmatpush1.bf16.msra.mxu0 %v3563_v22  ;;  %1183 = vmatpush1.bf16.msra.mxu1 %v3565_v25  ;;  %v4916_v22 = vld [vmem:[%s5739_s0 + $0x40] ss:$8 sps:$4 sm:$0xff]   ;;  %v155_v25 = vld [vmem:[%s5740_s1 + $0x290] sm:$0xff] }
  0x6f   :  { %1091 = vmatprep.subr.bf16.mxu0 %v3572_v26  ;;  %1184 = vmatprep.subr.bf16.mxu1 %v3574_v30  ;;  %v159_v26 = vld [vmem:[%s5740_s1 + $0x2b0] sm:$0xff]  ;;  %v3628_v30 = vcombine.high %v147_v15, %v151_v17 }
  0x71   :  { %944 = vmatmul.mubr.bf16.gmra.mrb[4].mxu0 %v4802_v29  ;;  %1037 = vmatmul.mubr.bf16.gmra.mrb[4].mxu1 %v4802_v29 }
  0x72   :  { %1092 = vmatpush1.bf16.msra.mxu0 %v3571_v31  ;;  %1185 = vmatpush1.bf16.msra.mxu1 %v3573_v35  ;;  %v156_v31 = vld [vmem:[%s5740_s1 + $0x298] sm:$0xff]  ;;  %v3627_v35 = vcombine.low %v147_v15, %v151_v17 }
  0x73   :  { %1093 = vmatprep.subr.bf16.mxu0 %v3580_v36  ;;  %1186 = vmatprep.subr.bf16.mxu1 %v3582_v39  ;;  %v163_v36 = vld [vmem:[%s5740_s1 + $0x2d0] sm:$0xff]  ;;  %v3636_v39 = vcombine.high %v155_v25, %v159_v26  ;;  %v200_v15 = vld [vmem:[%s5740_s1 + $0x3f8] sm:$0xff] }
  0x74   :  { %953 = vmatprep.mubr.bf16.mxu0 %v4815_v34  ;;  %1046 = vmatprep.mubr.bf16.mxu1 %v4815_v34 }
  0x76   :  { %1094 = vmatpush1.bf16.msra.mxu0 %v3579_v40  ;;  %1187 = vmatpush1.bf16.msra.mxu1 %v3581_v43  ;;  %v164_v40 = vld [vmem:[%s5740_s1 + $0x2d8] sm:$0xff]  ;;  %v3638_v43 = vcombine.high %v156_v31, %v160_v32 }
  0x77   :  { %1095 = vmatprep.subr.bf16.mxu0 %v3588_v44  ;;  %1188 = vmatprep.subr.bf16.mxu1 %v3590_v48  ;;  %v3635_v44 = vcombine.low %v155_v25, %v159_v26  ;;  %v3637_v48 = vcombine.low %v156_v31, %v160_v32  ;;  %v4093_v25 = vld [vmem:[%s5742_s3 + $0x4c] ss:$16 sps:$4 sm:$0xff]   ;;  %v4088_v26 = vld [vmem:[%s5742_s3 + $0x40] ss:$16 sps:$4 sm:$0xff]   ;;  %v4097_v32 = vld [vmem:[%s5742_s3 + $0x68] ss:$16 sps:$4 sm:$0xff]  }
  0x78   :  { %v4094_v31 = vld [vmem:[%s5742_s3 + $0x60] ss:$16 sps:$4 sm:$0xff]  }
  0x79   :  { %954 = vmatmul.mubr.bf16.gmra.mrb[8].mxu0 %v4840_v47  ;;  %1047 = vmatmul.mubr.bf16.gmra.mrb[8].mxu1 %v4840_v47 }
  0x7a   :  { %1096 = vmatpush1.bf16.msra.mxu0 %v3587_v49  ;;  %1189 = vmatpush1.bf16.msra.mxu1 %v3589_v53  ;;  %v3644_v49 = vcombine.high %v163_v36, %v167_v37  ;;  %v3646_v53 = vcombine.high %v164_v40, %v168_v41 }
  0x7b   :  { %1097 = vmatprep.subr.bf16.mxu0 %v3596_v54  ;;  %1190 = vmatprep.subr.bf16.mxu1 %v3598_v58  ;;  %v3643_v54 = vcombine.low %v163_v36, %v167_v37  ;;  %v3645_v58 = vcombine.low %v164_v40, %v168_v41  ;;  %v4100_v36 = vld [vmem:[%s5742_s3 + $0x80] ss:$16 sps:$4 sm:$0xff]   ;;  %v4103_v37 = vld [vmem:[%s5742_s3 + $0x88] ss:$16 sps:$4 sm:$0xff]  }
  0x7c   :  { %963 = vmatprep.mubr.bf16.mxu0 %v4853_v52  ;;  %1056 = vmatprep.mubr.bf16.mxu1 %v4853_v52  ;;  %v4106_v40 = vld [vmem:[%s5742_s3 + $0xa0] ss:$16 sps:$4 sm:$0xff]   ;;  %v4109_v41 = vld [vmem:[%s5742_s3 + $0xa8] ss:$16 sps:$4 sm:$0xff]  }
  0x7e   :  { %1098 = vmatpush1.bf16.msra.mxu0 %v3595_v59  ;;  %1191 = vmatpush1.bf16.msra.mxu1 %v3597_v62  ;;  %v3652_v59 = vcombine.high %v171_v45, %v175_v46  ;;  %v3654_v62 = vcombine.high %v172_v50, %v176_v51 }
  0x7f   :  { %1099 = vmatprep.subr.bf16.mxu0 %v3604_v63  ;;  %1192 = vmatprep.subr.bf16.mxu1 %v3606_v3  ;;  %v3651_v63 = vcombine.low %v171_v45, %v175_v46  ;;  %v3653_v3 = vcombine.low %v172_v50, %v176_v51  ;;  %v4115_v45 = vld [vmem:[%s5742_s3 + $0xc8] ss:$16 sps:$4 sm:$0xff]   ;;  %v4120_v46 = vld [vmem:[%s5742_s3 + $0xe4] ss:$16 sps:$4 sm:$0xff]  }
  0x80   :  { %v4121_v50 = vld [vmem:[%s5742_s3 + $0xe8] ss:$16 sps:$4 sm:$0xff]   ;;  %v4126_v51 = vld [vmem:[%s5742_s3 + $0x104] ss:$16 sps:$4 sm:$0xff]  }
  0x81   :  { %964 = vmatmul.mubr.bf16.gmra.mrb[12].mxu0 %v4878_v2  ;;  %1057 = vmatmul.mubr.bf16.gmra.mrb[12].mxu1 %v4878_v2 }
  0x82   :  { %1100 = vmatpush1.bf16.msra.mxu0 %v3603_v4  ;;  %1193 = vmatpush1.bf16.msra.mxu1 %v3605_v9  ;;  %v3660_v4 = vcombine.high %v179_v55, %v183_v57  ;;  %v3659_v9 = vcombine.low %v179_v55, %v183_v57  ;;  %v4127_v55 = vld [vmem:[%s5742_s3 + $0x108] ss:$16 sps:$4 sm:$0xff]   ;;  %v4132_v57 = vld [vmem:[%s5742_s3 + $0x124] ss:$16 sps:$4 sm:$0xff]  }
  0x83   :  { %1101 = vmatprep.subr.bf16.mxu0 %v3612_v10  ;;  %1194 = vmatprep.subr.bf16.mxu1 %v3614_v13  ;;  %v195_v10 = vld [vmem:[%s5740_s1 + $0x3d0] sm:$0xff]  ;;  %v3668_v13 = vcombine.high %v187_v0, %v191_v1 }
  0x84   :  { %973 = vmatprep.mubr.bf16.mxu0 %v4891_v7  ;;  %1066 = vmatprep.mubr.bf16.mxu1 %v4891_v7  ;;  %v3676_v20 = vcombine.high %v195_v10, %v199_v11 }
  0x86   :  { %1102 = vmatpush1.bf16.msra.mxu0 %v3611_v14  ;;  %1195 = vmatpush1.bf16.msra.mxu1 %v3613_v18  ;;  %v196_v14 = vld [vmem:[%s5740_s1 + $0x3d8] sm:$0xff]  ;;  %v3667_v18 = vcombine.low %v187_v0, %v191_v1  ;;  %v4144_v1 = vld [vmem:[%s5742_s3 + $0x164] ss:$16 sps:$4 sm:$0xff]  }
  0x87   :  { %1103 = vmatprep.subr.bf16.mxu0 %v3620_v19  ;;  %1196 = vmatprep.subr.bf16.mxu1 %v3622_v23  ;;  %v3678_v21 = vcombine.high %v196_v14, %v200_v15  ;;  %v3675_v23 = vcombine.low %v195_v10, %v199_v11  ;;  %v4139_v0 = vld [vmem:[%s5742_s3 + $0x148] ss:$16 sps:$4 sm:$0xff]   ;;  %v4156_v11 = vld [vmem:[%s5742_s3 + $0x1a4] ss:$16 sps:$4 sm:$0xff]  }
  0x88   :  { %v4151_v10 = vld [vmem:[%s5742_s3 + $0x188] ss:$16 sps:$4 sm:$0xff]  }
  0x89   :  { %974 = vmatmul.mubr.bf16.gmra.mrb[16].mxu0 %v4916_v22  ;;  %1067 = vmatmul.mubr.bf16.gmra.mrb[16].mxu1 %v4916_v22 }
  0x8a   :  { %1104 = vmatpush1.bf16.msra.mxu0 %v3619_v24  ;;  %1197 = vmatpush1.bf16.msra.mxu1 %v3621_v28  ;;  %v3677_v24 = vcombine.low %v196_v14, %v200_v15  ;;  %v4096_v28 = vld [vmem:[%s5742_s3 + $0x64] ss:$16 sps:$4 sm:$0xff]   ;;  %v4157_v14 = vld [vmem:[%s5742_s3 + $0x1a8] ss:$16 sps:$4 sm:$0xff]  }
  0x8b   :  { %1105 = vmatprep.subr.bf16.mxu0 %v3628_v30  ;;  %1198 = vmatprep.subr.bf16.mxu1 %v3630_v33  ;;  %v4099_v30 = vld [vmem:[%s5742_s3 + $0x6c] ss:$16 sps:$4 sm:$0xff]   ;;  %v4102_v33 = vld [vmem:[%s5742_s3 + $0x84] ss:$16 sps:$4 sm:$0xff]  }
  0x8c   :  { %983 = vmatprep.mubr.bf16.mxu0 %v4929_v27  ;;  %1076 = vmatprep.mubr.bf16.mxu1 %v4929_v27  ;;  %v4162_v15 = vld [vmem:[%s5742_s3 + $0x1c4] ss:$16 sps:$4 sm:$0xff]  }
  0x8e   :  { %1106 = vmatpush1.bf16.msra.mxu0 %v3627_v35  ;;  %1199 = vmatpush1.bf16.msra.mxu1 %v3629_v38  ;;  %v4105_v35 = vld [vmem:[%s5742_s3 + $0x8c] ss:$16 sps:$4 sm:$0xff]   ;;  %v4108_v38 = vld [vmem:[%s5742_s3 + $0xa4] ss:$16 sps:$4 sm:$0xff]  }
  0x8f   :  { %1107 = vmatprep.subr.bf16.mxu0 %v3636_v39  ;;  %1200 = vmatprep.subr.bf16.mxu1 %v3638_v43  ;;  %v4111_v39 = vld [vmem:[%s5742_s3 + $0xac] ss:$16 sps:$4 sm:$0xff]  }
  0x90   :  { %v4117_v43 = vld [vmem:[%s5742_s3 + $0xcc] ss:$16 sps:$4 sm:$0xff]  }
  0x91   :  { %984 = vmatmul.mubr.bf16.gmra.mrb[20].mxu0 %v4954_v42  ;;  %1077 = vmatmul.mubr.bf16.gmra.mrb[20].mxu1 %v4954_v42 }
  0x92   :  { %1108 = vmatpush1.bf16.msra.mxu0 %v3635_v44  ;;  %1201 = vmatpush1.bf16.msra.mxu1 %v3637_v48  ;;  %v4112_v44 = vld [vmem:[%s5742_s3 + $0xc0] ss:$16 sps:$4 sm:$0xff]   ;;  %v4123_v48 = vld [vmem:[%s5742_s3 + $0xec] ss:$16 sps:$4 sm:$0xff]  }
  0x93   :  { %1109 = vmatprep.subr.bf16.mxu0 %v3644_v49  ;;  %1202 = vmatprep.subr.bf16.mxu1 %v3646_v53  ;;  %v4118_v49 = vld [vmem:[%s5742_s3 + $0xe0] ss:$16 sps:$4 sm:$0xff]   ;;  %v4129_v53 = vld [vmem:[%s5742_s3 + $0x10c] ss:$16 sps:$4 sm:$0xff]  }
  0x94   :  { %1119 = vmatprep.mubr.bf16.mxu0 %v4633_v56  ;;  %1212 = vmatprep.mubr.bf16.mxu1 %v4633_v56  ;;  %v192_v56 = vld [vmem:[%s5740_s1 + $0x3b8] sm:$0xff] }
  0x95   :  { %v3670_v17 = vcombine.high %v188_v5, %v192_v56  ;;  %v3669_v19 = vcombine.low %v188_v5, %v192_v56  ;;  %v4145_v5 = vld [vmem:[%s5742_s3 + $0x168] ss:$16 sps:$4 sm:$0xff]   ;;  %v4150_v56 = vld [vmem:[%s5742_s3 + $0x184] ss:$16 sps:$4 sm:$0xff]  }
  0x96   :  { %1110 = vmatpush1.bf16.msra.mxu0 %v3643_v54  ;;  %1203 = vmatpush1.bf16.msra.mxu1 %v3645_v58  ;;  %v4124_v54 = vld [vmem:[%s5742_s3 + $0x100] ss:$16 sps:$4 sm:$0xff]   ;;  %v4135_v58 = vld [vmem:[%s5742_s3 + $0x12c] ss:$16 sps:$4 sm:$0xff]  }
  0x97   :  { %1111 = vmatprep.subr.bf16.mxu0 %v3652_v59  ;;  %1204 = vmatprep.subr.bf16.mxu1 %v3654_v62  ;;  %v4130_v59 = vld [vmem:[%s5742_s3 + $0x120] ss:$16 sps:$4 sm:$0xff]   ;;  %v4141_v62 = vld [vmem:[%s5742_s3 + $0x14c] ss:$16 sps:$4 sm:$0xff]  }
  0x9a   :  { %1112 = vmatpush1.bf16.msra.mxu0 %v3651_v63  ;;  %1205 = vmatpush1.bf16.msra.mxu1 %v3653_v3  ;;  %v4136_v63 = vld [vmem:[%s5742_s3 + $0x140] ss:$16 sps:$4 sm:$0xff]   ;;  %v4147_v3 = vld [vmem:[%s5742_s3 + $0x16c] ss:$16 sps:$4 sm:$0xff]  }
  0x9b   :  { %1113 = vmatprep.subr.bf16.mxu0 %v3660_v4  ;;  %1206 = vmatprep.subr.bf16.mxu1 %v3662_v6  ;;  %v4142_v4 = vld [vmem:[%s5742_s3 + $0x160] ss:$16 sps:$4 sm:$0xff]   ;;  %v4153_v6 = vld [vmem:[%s5742_s3 + $0x18c] ss:$16 sps:$4 sm:$0xff]  }
  0x9e   :  { %1114 = vmatpush1.bf16.msra.mxu0 %v3659_v9  ;;  %1207 = vmatpush1.bf16.msra.mxu1 %v3661_v12  ;;  %v4148_v9 = vld [vmem:[%s5742_s3 + $0x180] ss:$16 sps:$4 sm:$0xff]   ;;  %v4159_v12 = vld [vmem:[%s5742_s3 + $0x1ac] ss:$16 sps:$4 sm:$0xff]  }
  0x9f   :  { %1115 = vmatprep.subr.bf16.mxu0 %v3668_v13  ;;  %1208 = vmatprep.subr.bf16.mxu1 %v3670_v17  ;;  %v4154_v13 = vld [vmem:[%s5742_s3 + $0x1a0] ss:$16 sps:$4 sm:$0xff]   ;;  %v4165_v17 = vld [vmem:[%s5742_s3 + $0x1cc] ss:$16 sps:$4 sm:$0xff]  }
  0xa2   :  { %1116 = vmatpush1.bf16.msra.mxu0 %v3667_v18  ;;  %1209 = vmatpush1.bf16.msra.mxu1 %v3669_v19  ;;  %v4160_v18 = vld [vmem:[%s5742_s3 + $0x1c0] ss:$16 sps:$4 sm:$0xff]   ;;  %v4163_v19 = vld [vmem:[%s5742_s3 + $0x1c8] ss:$16 sps:$4 sm:$0xff]  }
  0xa3   :  { %1117 = vmatprep.subr.bf16.mxu0 %v3676_v20  ;;  %1210 = vmatprep.subr.bf16.mxu1 %v3678_v21  ;;  %v4168_v20 = vld [vmem:[%s5742_s3 + $0x1e4] ss:$16 sps:$4 sm:$0xff]   ;;  %v4171_v21 = vld [vmem:[%s5742_s3 + $0x1ec] ss:$16 sps:$4 sm:$0xff]  }
  0xa6   :  { %1118 = vmatpush1.bf16.msra.mxu0 %v3675_v23  ;;  %1211 = vmatpush1.bf16.msra.mxu1 %v3677_v24  ;;  %v4166_v23 = vld [vmem:[%s5742_s3 + $0x1e0] ss:$16 sps:$4 sm:$0xff]   ;;  %v4169_v24 = vld [vmem:[%s5742_s3 + $0x1e8] ss:$16 sps:$4 sm:$0xff]  }
  0xa9   :  { %1120 = vmatmul.mubr.bf16.vlgmr.msra.gmra.mrb[24].mxu0 %v4760_v8  ;;  %1213 = vmatmul.mubr.bf16.vlgmr.msra.gmra.mrb[24].mxu1 %v4760_v8  ;;  %v4076_v8 = vld [vmem:[%s5742_s3] ss:$16 sps:$4 sm:$0xff]  }
  0xaa   :  { %1129 = vmatprep.mubr.bf16.mxu0 %v4777_v16  ;;  %1222 = vmatprep.mubr.bf16.mxu1 %v4777_v16  ;;  %v4078_v16 = vld [vmem:[%s5742_s3 + $0x4] ss:$16 sps:$4 sm:$0xff]  }
  0xab   :  { %2564 = vmatprep.subr.bf16.mxu0 %v4078_v16  ;;  %v4177_v16 = vld [vmem:[%s5742_s3 + $0x20c] ss:$16 sps:$4 sm:$0xff]  }
  0xac   :  { %2565 = vmatpush1.bf16.msra.mxu0 %v4076_v8  ;;  %v4174_v8 = vld [vmem:[%s5742_s3 + $0x204] ss:$16 sps:$4 sm:$0xff]  }
  0xb1   :  { %1130 = vmatmul.mubr.bf16.gmra.mrb[28].mxu0 %v4802_v29  ;;  %1223 = vmatmul.mubr.bf16.gmra.mrb[28].mxu1 %v4802_v29  ;;  %v4079_v29 = vld [vmem:[%s5742_s3 + $0x8] ss:$16 sps:$4 sm:$0xff]  }
  0xb2   :  { %1139 = vmatprep.mubr.bf16.mxu0 %v4815_v34  ;;  %1232 = vmatprep.mubr.bf16.mxu1 %v4815_v34  ;;  %v4081_v34 = vld [vmem:[%s5742_s3 + $0xc] ss:$16 sps:$4 sm:$0xff]  }
  0xb3   :  { %2783 = vmatprep.subr.bf16.mxu1 %v4081_v34 }
  0xb4   :  { %2784 = vmatpush1.bf16.msra.mxu1 %v4079_v29 }
  0xb9   :  { %1140 = vmatmul.mubr.bf16.gmra.mrb[32].mxu0 %v4840_v47  ;;  %1233 = vmatmul.mubr.bf16.gmra.mrb[32].mxu1 %v4840_v47  ;;  %v4084_v47 = vld [vmem:[%s5742_s3 + $0x24] ss:$16 sps:$4 sm:$0xff]  }
  0xba   :  { %1149 = vmatprep.mubr.bf16.mxu0 %v4853_v52  ;;  %1242 = vmatprep.mubr.bf16.mxu1 %v4853_v52  ;;  %v4087_v52 = vld [vmem:[%s5742_s3 + $0x2c] ss:$16 sps:$4 sm:$0xff]  }
  0xbb   :  { %2566 = vmatprep.subr.bf16.mxu0 %v4084_v47  ;;  %2785 = vmatprep.subr.bf16.mxu1 %v4087_v52 }
  0xc1   :  { %1150 = vmatmul.mubr.bf16.gmra.mrb[36].mxu0 %v4878_v2  ;;  %1243 = vmatmul.mubr.bf16.gmra.mrb[36].mxu1 %v4878_v2  ;;  %v4082_v2 = vld [vmem:[%s5742_s3 + $0x20] ss:$16 sps:$4 sm:$0xff]  }
  0xc2   :  { %1159 = vmatprep.mubr.bf16.mxu0 %v4891_v7  ;;  %1252 = vmatprep.mubr.bf16.mxu1 %v4891_v7  ;;  %v4085_v7 = vld [vmem:[%s5742_s3 + $0x28] ss:$16 sps:$4 sm:$0xff]  }
  0xc3   :  { %2567 = vmatpush1.bf16.msra.mxu0 %v4082_v2  ;;  %2786 = vmatpush1.bf16.msra.mxu1 %v4085_v7 }
  0xc4   :  { %2787 = vmatprep.subr.bf16.mxu1 %v4093_v25 }
  0xc9   :  { %1160 = vmatmul.mubr.bf16.gmra.mrb[40].mxu0 %v4916_v22  ;;  %1253 = vmatmul.mubr.bf16.gmra.mrb[40].mxu1 %v4916_v22  ;;  %v4090_v22 = vld [vmem:[%s5742_s3 + $0x44] ss:$16 sps:$4 sm:$0xff]  }
  0xca   :  { %1169 = vmatprep.mubr.bf16.mxu0 %v4929_v27  ;;  %1262 = vmatprep.mubr.bf16.mxu1 %v4929_v27  ;;  %v4091_v27 = vld [vmem:[%s5742_s3 + $0x48] ss:$16 sps:$4 sm:$0xff]  }
  0xcb   :  { %2568 = vmatprep.subr.bf16.mxu0 %v4090_v22  ;;  %2788 = vmatpush1.bf16.msra.mxu1 %v4091_v27  ;;  %v5233_v27 = vld [vmem:[%s5741_s2] ss:$0 sm:$0xff] }
  0xcc   :  { %2569 = vmatpush1.bf16.msra.mxu0 %v4088_v26  ;;  %2789 = vmatprep.subr.bf16.mxu1 %v4099_v30 }
  0xcd   :  { %2570 = vmatprep.subr.bf16.mxu0 %v4096_v28 }
  0xcf   :  { %2790 = vmatpush1.bf16.msra.mxu1 %v4097_v32 }
  0xd0   :  { %2571 = vmatpush1.bf16.msra.mxu0 %v4094_v31  ;;  %2791 = vmatprep.subr.bf16.mxu1 %v4105_v35 }
  0xd1   :  { %1170 = vmatmul.mubr.bf16.gmra.mrb[44].mxu0 %v4954_v42  ;;  %1263 = vmatmul.mubr.bf16.gmra.mrb[44].mxu1 %v4954_v42  ;;  %v4114_v42 = vld [vmem:[%s5742_s3 + $0xc4] ss:$16 sps:$4 sm:$0xff]  }
  0xd2   :  { %2572 = vmatprep.subr.bf16.mxu0 %v4102_v33 }
  0xd3   :  { %2792 = vmatpush1.bf16.msra.mxu1 %v4103_v37 }
  0xd4   :  { %2573 = vmatpush1.bf16.msra.mxu0 %v4100_v36  ;;  %2793 = vmatprep.subr.bf16.mxu1 %v4111_v39 }
  0xd5   :  { %2574 = vmatprep.subr.bf16.mxu0 %v4108_v38 }
  0xd7   :  { %2794 = vmatpush1.bf16.msra.mxu1 %v4109_v41 }
  0xd8   :  { %2575 = vmatpush1.bf16.msra.mxu0 %v4106_v40  ;;  %2795 = vmatprep.subr.bf16.mxu1 %v4117_v43 }
  0xd9   :  { %2576 = vmatprep.subr.bf16.mxu0 %v4114_v42 }
  0xdb   :  { %2796 = vmatpush1.bf16.msra.mxu1 %v4115_v45 }
  0xdc   :  { %2577 = vmatpush1.bf16.msra.mxu0 %v4112_v44  ;;  %2797 = vmatprep.subr.bf16.mxu1 %v4123_v48 }
  0xdd   :  { %2578 = vmatprep.subr.bf16.mxu0 %v4120_v46 }
  0xdf   :  { %2798 = vmatpush1.bf16.msra.mxu1 %v4121_v50 }
  0xe0   :  { %2579 = vmatpush1.bf16.msra.mxu0 %v4118_v49  ;;  %2799 = vmatprep.subr.bf16.mxu1 %v4129_v53 }
  0xe1   :  { %2580 = vmatprep.subr.bf16.mxu0 %v4126_v51 }
  0xe3   :  { %2800 = vmatpush1.bf16.msra.mxu1 %v4127_v55 }
  0xe4   :  { %2581 = vmatpush1.bf16.msra.mxu0 %v4124_v54  ;;  %2801 = vmatprep.subr.bf16.mxu1 %v4135_v58 }
  0xe5   :  { %2582 = vmatprep.subr.bf16.mxu0 %v4132_v57 }
  0xe7   :  { %2802 = vmatpush1.bf16.msra.mxu1 %v4133_v60 }
  0xe8   :  { %2583 = vmatpush1.bf16.msra.mxu0 %v4130_v59  ;;  %2803 = vmatprep.subr.bf16.mxu1 %v4141_v62 }
  0xe9   :  { %2584 = vmatprep.subr.bf16.mxu0 %v4138_v61 }
  0xeb   :  { %2804 = vmatpush1.bf16.msra.mxu1 %v4139_v0 }
  0xec   :  { %2585 = vmatpush1.bf16.msra.mxu0 %v4136_v63  ;;  %2805 = vmatprep.subr.bf16.mxu1 %v4147_v3 }
  0xed   :  { %2586 = vmatprep.subr.bf16.mxu0 %v4144_v1 }
  0xef   :  { %2806 = vmatpush1.bf16.msra.mxu1 %v4145_v5 }
  0xf0   :  { %2587 = vmatpush1.bf16.msra.mxu0 %v4142_v4  ;;  %2807 = vmatprep.subr.bf16.mxu1 %v4153_v6 }
  0xf1   :  { %2588 = vmatprep.subr.bf16.mxu0 %v4150_v56 }
  0xf3   :  { %2808 = vmatpush1.bf16.msra.mxu1 %v4151_v10 }
  0xf4   :  { %2589 = vmatpush1.bf16.msra.mxu0 %v4148_v9  ;;  %2809 = vmatprep.subr.bf16.mxu1 %v4159_v12 }
  0xf5   :  { %2590 = vmatprep.subr.bf16.mxu0 %v4156_v11 }
  0xf7   :  { %2810 = vmatpush1.bf16.msra.mxu1 %v4157_v14 }
  0xf8   :  { %2591 = vmatpush1.bf16.msra.mxu0 %v4154_v13  ;;  %2811 = vmatprep.subr.bf16.mxu1 %v4165_v17 }
  0xf9   :  { %2592 = vmatprep.subr.bf16.mxu0 %v4162_v15 }
  0xfb   :  { %2812 = vmatpush1.bf16.msra.mxu1 %v4163_v19 }
  0xfc   :  { %2593 = vmatpush1.bf16.msra.mxu0 %v4160_v18  ;;  %2813 = vmatprep.subr.bf16.mxu1 %v4171_v21 }
  0xfd   :  { %2594 = vmatprep.subr.bf16.mxu0 %v4168_v20 }
  0xff   :  { %2814 = vmatpush1.bf16.msra.mxu1 %v4169_v24 }
 0x100   :  { %2595 = vmatpush1.bf16.msra.mxu0 %v4166_v23  ;;  %2856 = vmatprep.subr.bf16.mxu1 %v4177_v16 }
 0x101   :  { %2637 = vmatprep.subr.bf16.mxu0 %v4174_v8 }
 0x13c   :  { %v935_v29 = vpop.f32.mrb[0].mxu0  ;;  %v1028_v34 = vpop.f32.mrb[0].mxu1 }
 0x13d   :  { %v937_v47 = vpop.f32.mrb[1].mxu0  ;;  %v1273_v52 = vmax.f32 %v935_v29, %v1028_v34  ;;  %v1030_v2 = vpop.f32.mrb[1].mxu1 }
 0x13e   :  { %v939_v7 = vpop.f32.mrb[2].mxu0  ;;  %v1274_v22 = vmax.f32 %v937_v47, %v1030_v2  ;;  %v1032_v25 = vpop.f32.mrb[2].mxu1 }
 0x13f   :  { %v941_v26 = vpop.f32.mrb[3].mxu0  ;;  %v1275_v28 = vmax.f32 %v939_v7, %v1032_v25  ;;  %v1034_v30 = vpop.f32.mrb[3].mxu1 }
 0x140   :  { %v1322_v31 = vmax.f32 %v1273_v52, %v1274_v22  ;;  %v1276_v32 = vmax.f32 %v941_v26, %v1034_v30 }
 0x142   :  { %v1340_v33 = vadd.f32 %v5233_v27, %v1322_v31  ;;  %v1323_v35 = vmax.f32 %v1275_v28, %v1276_v32 }
 0x144   :  { %v945_v36 = vpop.f32.mrb[4].mxu0  ;;  %v1341_v37 = vadd.f32 %v5233_v27, %v1323_v35  ;;  %v1038_v38 = vpop.f32.mrb[4].mxu1  ;;  %v1352_v43 = vmax.f32 %v1340_v33, 0.0 }
 0x145   :  { %v947_v39 = vpop.f32.mrb[5].mxu0  ;;  %v1277_v40 = vmax.f32 %v945_v36, %v1038_v38  ;;  %v1040_v41 = vpop.f32.mrb[5].mxu1 }
 0x146   :  { %v949_v42 = vpop.f32.mrb[6].mxu0  ;;  %v1353_v44 = vmax.f32 %v1341_v37, 0.0  ;;  %v1278_v45 = vmax.f32 %v947_v39, %v1040_v41  ;;  %v1042_v46 = vpop.f32.mrb[6].mxu1 }
 0x147   :  { %v951_v48 = vpop.f32.mrb[7].mxu0  ;;  %v1279_v49 = vmax.f32 %v949_v42, %v1042_v46  ;;  %v1044_v50 = vpop.f32.mrb[7].mxu1 }
 0x148   :  { %v5237_v51 = vpack.c.bf16 %v1353_v44, %v1352_v43  ;;  %v1324_v53 = vmax.f32 %v1277_v40, %v1278_v45  ;;  %v1280_v54 = vmax.f32 %v951_v48, %v1044_v50 }
 0x14a   :  { %v1342_v55 = vadd.f32 %v5233_v27, %v1324_v53  ;;  %v1325_v57 = vmax.f32 %v1279_v49, %v1280_v54 }
 0x14c   :  { %v955_v58 = vpop.f32.mrb[8].mxu0  ;;  %v1354_v59 = vmax.f32 %v1342_v55, 0.0  ;;  %v1343_v60 = vadd.f32 %v5233_v27, %v1325_v57  ;;  %v1048_v61 = vpop.f32.mrb[8].mxu1 }
 0x14d   :  { %v957_v62 = vpop.f32.mrb[9].mxu0  ;;  %v1281_v63 = vmax.f32 %v955_v58, %v1048_v61  ;;  %v1050_v0 = vpop.f32.mrb[9].mxu1 }
 0x14e   :  { %v959_v1 = vpop.f32.mrb[10].mxu0  ;;  %v1355_v3 = vmax.f32 %v1343_v60, 0.0  ;;  %v1282_v4 = vmax.f32 %v957_v62, %v1050_v0  ;;  %v1052_v5 = vpop.f32.mrb[10].mxu1 }
 0x14f   :  { %v961_v56 = vpop.f32.mrb[11].mxu0  ;;  %v1283_v6 = vmax.f32 %v959_v1, %v1052_v5  ;;  %v1054_v9 = vpop.f32.mrb[11].mxu1 }
 0x150   :  { %v5241_v10 = vpack.c.bf16 %v1355_v3, %v1354_v59  ;;  %v1326_v11 = vmax.f32 %v1281_v63, %v1282_v4  ;;  %v1284_v12 = vmax.f32 %v961_v56, %v1054_v9 }
 0x152   :  { %v1344_v13 = vadd.f32 %v5233_v27, %v1326_v11  ;;  %v1327_v14 = vmax.f32 %v1283_v6, %v1284_v12 }
 0x154   :  { %v965_v15 = vpop.f32.mrb[12].mxu0  ;;  %v1356_v17 = vmax.f32 %v1344_v13, 0.0  ;;  %v1345_v18 = vadd.f32 %v5233_v27, %v1327_v14  ;;  %v1058_v19 = vpop.f32.mrb[12].mxu1 }
 0x155   :  { %v967_v20 = vpop.f32.mrb[13].mxu0  ;;  %v1285_v21 = vmax.f32 %v965_v15, %v1058_v19  ;;  %v1060_v23 = vpop.f32.mrb[13].mxu1 }
 0x156   :  { %v969_v24 = vpop.f32.mrb[14].mxu0  ;;  %v1357_v8 = vmax.f32 %v1345_v18, 0.0  ;;  %v1286_v16 = vmax.f32 %v967_v20, %v1060_v23  ;;  %v1062_v29 = vpop.f32.mrb[14].mxu1 }
 0x157   :  { %v971_v34 = vpop.f32.mrb[15].mxu0  ;;  %v1287_v47 = vmax.f32 %v969_v24, %v1062_v29  ;;  %v1064_v52 = vpop.f32.mrb[15].mxu1 }
 0x158   :  { %v5245_v2 = vpack.c.bf16 %v1357_v8, %v1356_v17  ;;  %v1328_v7 = vmax.f32 %v1285_v21, %v1286_v16  ;;  %v1288_v22 = vmax.f32 %v971_v34, %v1064_v52 }
 0x15a   :  { %v1346_v25 = vadd.f32 %v5233_v27, %v1328_v7  ;;  %v1329_v26 = vmax.f32 %v1287_v47, %v1288_v22 }
 0x15c   :  { %v975_v28 = vpop.f32.mrb[16].mxu0  ;;  %v1358_v30 = vmax.f32 %v1346_v25, 0.0  ;;  %v1347_v31 = vadd.f32 %v5233_v27, %v1329_v26  ;;  %v1068_v32 = vpop.f32.mrb[16].mxu1 }
 0x15d   :  { %v977_v33 = vpop.f32.mrb[17].mxu0  ;;  %v1289_v35 = vmax.f32 %v975_v28, %v1068_v32  ;;  %v1070_v36 = vpop.f32.mrb[17].mxu1 }
 0x15e   :  { %v979_v37 = vpop.f32.mrb[18].mxu0  ;;  %v1359_v38 = vmax.f32 %v1347_v31, 0.0  ;;  %v1290_v39 = vmax.f32 %v977_v33, %v1070_v36  ;;  %v1072_v40 = vpop.f32.mrb[18].mxu1 }
 0x15f   :  { %v981_v41 = vpop.f32.mrb[19].mxu0  ;;  %v1291_v42 = vmax.f32 %v979_v37, %v1072_v40  ;;  %v1074_v43 = vpop.f32.mrb[19].mxu1 }
 0x160   :  { %v5249_v44 = vpack.c.bf16 %v1359_v38, %v1358_v30  ;;  %v1330_v45 = vmax.f32 %v1289_v35, %v1290_v39  ;;  %v1292_v46 = vmax.f32 %v981_v41, %v1074_v43 }
 0x162   :  { %v1348_v48 = vadd.f32 %v5233_v27, %v1330_v45  ;;  %v1331_v49 = vmax.f32 %v1291_v42, %v1292_v46  ;;  %v4172_v45 = vld [vmem:[%s5742_s3 + $0x200] ss:$16 sps:$4 sm:$0xff]   ;;  %v4175_v46 = vld [vmem:[%s5742_s3 + $0x208] ss:$16 sps:$4 sm:$0xff]  }
 0x164   :  { %v985_v50 = vpop.f32.mrb[20].mxu0  ;;  %v1360_v53 = vmax.f32 %v1348_v48, 0.0  ;;  %v1349_v54 = vadd.f32 %v5233_v27, %v1331_v49  ;;  %v1078_v55 = vpop.f32.mrb[20].mxu1  ;;  %v4180_v48 = vld [vmem:[%s5742_s3 + $0x224] ss:$16 sps:$4 sm:$0xff]  }
 0x165   :  { %v987_v57 = vpop.f32.mrb[21].mxu0  ;;  %v1293_v58 = vmax.f32 %v985_v50, %v1078_v55  ;;  %v1080_v59 = vpop.f32.mrb[21].mxu1  ;;  %v4183_v49 = vld [vmem:[%s5742_s3 + $0x22c] ss:$16 sps:$4 sm:$0xff]   ;;  %v4178_v55 = vld [vmem:[%s5742_s3 + $0x220] ss:$16 sps:$4 sm:$0xff]  }
 0x166   :  { %v989_v60 = vpop.f32.mrb[22].mxu0  ;;  %v1361_v61 = vmax.f32 %v1349_v54, 0.0  ;;  %v1294_v62 = vmax.f32 %v987_v57, %v1080_v59  ;;  %v1082_v63 = vpop.f32.mrb[22].mxu1 }
 0x167   :  { %v991_v0 = vpop.f32.mrb[23].mxu0  ;;  %v1295_v1 = vmax.f32 %v989_v60, %v1082_v63  ;;  %v1084_v3 = vpop.f32.mrb[23].mxu1 }
 0x168   :  { %v5253_v4 = vpack.c.bf16 %v1361_v61, %v1360_v53  ;;  %v1332_v5 = vmax.f32 %v1293_v58, %v1294_v62  ;;  %v1296_v56 = vmax.f32 %v991_v0, %v1084_v3  ;;  %v4181_v61 = vld [vmem:[%s5742_s3 + $0x228] ss:$16 sps:$4 sm:$0xff]  }
 0x16a   :  { %v1350_v6 = vadd.f32 %v5233_v27, %v1332_v5  ;;  %v1333_v9 = vmax.f32 %v1295_v1, %v1296_v56  ;;  %v4189_v1 = vld [vmem:[%s5742_s3 + $0x24c] ss:$16 sps:$4 sm:$0xff]  }
 0x16c   :  { %v1362_v11 = vmax.f32 %v1350_v6, 0.0  ;;  %v1351_v12 = vadd.f32 %v5233_v27, %v1333_v9 }
 0x16e   :  { %v1363_v13 = vmax.f32 %v1351_v12, 0.0 }
 0x170   :  { %v5257_v14 = vpack.c.bf16 %v1363_v13, %v1362_v11 }
 0x17c   :  { %v1121_v15 = vpop.f32.mrb[24].mxu0  ;;  %v1214_v17 = vpop.f32.mrb[24].mxu1 }
 0x17d   :  { %v1123_v18 = vpop.f32.mrb[25].mxu0  ;;  %v1297_v19 = vmax.f32 %v1121_v15, %v1214_v17  ;;  %v1216_v20 = vpop.f32.mrb[25].mxu1  ;;  %v4184_v17 = vld [vmem:[%s5742_s3 + $0x240] ss:$16 sps:$4 sm:$0xff]  }
 0x17e   :  { %v1125_v21 = vpop.f32.mrb[26].mxu0  ;;  %v1298_v23 = vmax.f32 %v1123_v18, %v1216_v20  ;;  %v1218_v24 = vpop.f32.mrb[26].mxu1  ;;  %v4187_v18 = vld [vmem:[%s5742_s3 + $0x248] ss:$16 sps:$4 sm:$0xff]   ;;  %v4195_v20 = vld [vmem:[%s5742_s3 + $0x26c] ss:$16 sps:$4 sm:$0xff]  }
 0x17f   :  { %v1127_v8 = vpop.f32.mrb[27].mxu0  ;;  %v1299_v16 = vmax.f32 %v1125_v21, %v1218_v24  ;;  %v1220_v29 = vpop.f32.mrb[27].mxu1 }
 0x180   :  { %v1364_v34 = vmax.f32 %v1297_v19, %v1298_v23  ;;  %v1300_v47 = vmax.f32 %v1127_v8, %v1220_v29  ;;  %v4192_v19 = vld [vmem:[%s5742_s3 + $0x264] ss:$16 sps:$4 sm:$0xff]   ;;  %v4190_v8 = vld [vmem:[%s5742_s3 + $0x260] ss:$16 sps:$4 sm:$0xff]  }
 0x182   :  { %v1376_v52 = vadd.f32 %v5233_v27, %v1364_v34  ;;  %v1365_v7 = vmax.f32 %v1299_v16, %v1300_v47 }
 0x184   :  { %v1131_v22 = vpop.f32.mrb[28].mxu0  ;;  %v1377_v25 = vadd.f32 %v5233_v27, %v1365_v7  ;;  %v1224_v26 = vpop.f32.mrb[28].mxu1  ;;  %v1388_v33 = vmax.f32 %v1376_v52, 0.0  ;;  %v4193_v52 = vld [vmem:[%s5742_s3 + $0x268] ss:$16 sps:$4 sm:$0xff]  }
 0x185   :  { %v1133_v28 = vpop.f32.mrb[29].mxu0  ;;  %v1301_v30 = vmax.f32 %v1131_v22, %v1224_v26  ;;  %v1226_v31 = vpop.f32.mrb[29].mxu1  ;;  %v4198_v26 = vld [vmem:[%s5742_s3 + $0x284] ss:$16 sps:$4 sm:$0xff]  }
 0x186   :  { %v1135_v32 = vpop.f32.mrb[30].mxu0  ;;  %v1389_v35 = vmax.f32 %v1377_v25, 0.0  ;;  %v1302_v36 = vmax.f32 %v1133_v28, %v1226_v31  ;;  %v1228_v37 = vpop.f32.mrb[30].mxu1  ;;  %v4201_v28 = vld [vmem:[%s5742_s3 + $0x28c] ss:$16 sps:$4 sm:$0xff]  }
 0x187   :  { %v1137_v38 = vpop.f32.mrb[31].mxu0  ;;  %v1303_v39 = vmax.f32 %v1135_v32, %v1228_v37  ;;  %v1230_v40 = vpop.f32.mrb[31].mxu1 }
 0x188   :  { %v1366_v41 = vmax.f32 %v1301_v30, %v1302_v36  ;;  %v1304_v42 = vmax.f32 %v1137_v38, %v1230_v40  ;;  %v1406_v43 = vpack.c.bf16 %v1389_v35, %v1388_v33  ;;  %v4196_v40 = vld [vmem:[%s5742_s3 + $0x280] ss:$16 sps:$4 sm:$0xff]  }
 0x18a   :  { %v1378_v50 = vadd.f32 %v5233_v27, %v1366_v41  ;;  %v1367_v53 = vmax.f32 %v1303_v39, %v1304_v42  ;;  %2596 = vmatprep.mubr.bf16.mxu0 %v1406_v43  ;;  %2815 = vmatprep.mubr.bf16.mxu1 %v1406_v43  ;;  %v4199_v41 = vld [vmem:[%s5742_s3 + $0x288] ss:$16 sps:$4 sm:$0xff]   ;;  %v4204_v42 = vld [vmem:[%s5742_s3 + $0x2a4] ss:$16 sps:$4 sm:$0xff]   ;;  %v4207_v43 = vld [vmem:[%s5742_s3 + $0x2ac] ss:$16 sps:$4 sm:$0xff]  }
 0x18b   :  { %2597 = vmatmul.mubr.bf16.vlgmr.msra.gmra.mrb[48].mxu0 %v5237_v51  ;;  %2816 = vmatmul.mubr.bf16.vlgmr.msra.gmra.mrb[48].mxu1 %v5237_v51  ;;  %v4186_v51 = vld [vmem:[%s5742_s3 + $0x244] ss:$16 sps:$4 sm:$0xff]  }
 0x18c   :  { %v1141_v54 = vpop.f32.mrb[32].mxu0  ;;  %v1390_v57 = vmax.f32 %v1378_v50, 0.0  ;;  %v1379_v58 = vadd.f32 %v5233_v27, %v1367_v53  ;;  %2638 = vmatpush1.bf16.msra.mxu0 %v4172_v45  ;;  %2857 = vmatpush1.bf16.msra.mxu1 %v4175_v46  ;;  %v1234_v59 = vpop.f32.mrb[32].mxu1 }
 0x18d   :  { %v1143_v60 = vpop.f32.mrb[33].mxu0  ;;  %v1305_v62 = vmax.f32 %v1141_v54, %v1234_v59  ;;  %v1236_v63 = vpop.f32.mrb[33].mxu1  ;;  %2639 = vmatprep.subr.bf16.mxu0 %v4180_v48  ;;  %2858 = vmatprep.subr.bf16.mxu1 %v4183_v49  ;;  %v4202_v48 = vld [vmem:[%s5742_s3 + $0x2a0] ss:$16 sps:$4 sm:$0xff]   ;;  %v4205_v54 = vld [vmem:[%s5742_s3 + $0x2a8] ss:$16 sps:$4 sm:$0xff]  }
 0x18e   :  { %v1145_v0 = vpop.f32.mrb[34].mxu0  ;;  %v1391_v3 = vmax.f32 %v1379_v58, 0.0  ;;  %v1306_v5 = vmax.f32 %v1143_v60, %v1236_v63  ;;  %v1238_v56 = vpop.f32.mrb[34].mxu1  ;;  %v4210_v58 = vld [vmem:[%s5742_s3 + $0x2c4] ss:$16 sps:$4 sm:$0xff]  }
 0x18f   :  { %v1147_v6 = vpop.f32.mrb[35].mxu0  ;;  %v1307_v9 = vmax.f32 %v1145_v0, %v1238_v56  ;;  %v1240_v11 = vpop.f32.mrb[35].mxu1  ;;  %v4213_v59 = vld [vmem:[%s5742_s3 + $0x2cc] ss:$16 sps:$4 sm:$0xff]  }
 0x190   :  { %v5289_v12 = vpack.c.bf16 %v1391_v3, %v1390_v57  ;;  %v1368_v13 = vmax.f32 %v1305_v62, %v1306_v5  ;;  %v1308_v15 = vmax.f32 %v1147_v6, %v1240_v11  ;;  %2640 = vmatpush1.bf16.msra.mxu0 %v4178_v55  ;;  %2859 = vmatpush1.bf16.msra.mxu1 %v4181_v61  ;;  %v4208_v6 = vld [vmem:[%s5742_s3 + $0x2c0] ss:$16 sps:$4 sm:$0xff]  }
 0x191   :  { %2641 = vmatprep.subr.bf16.mxu0 %v4186_v51  ;;  %2860 = vmatprep.subr.bf16.mxu1 %v4189_v1 }
 0x192   :  { %v1380_v21 = vadd.f32 %v5233_v27, %v1368_v13  ;;  %v1369_v23 = vmax.f32 %v1307_v9, %v1308_v15  ;;  %2606 = vmatprep.mubr.bf16.mxu0 %v5289_v12  ;;  %2825 = vmatprep.mubr.bf16.mxu1 %v5289_v12  ;;  %v4211_v9 = vld [vmem:[%s5742_s3 + $0x2c8] ss:$16 sps:$4 sm:$0xff]   ;;  %v4216_v15 = vld [vmem:[%s5742_s3 + $0x2e4] ss:$16 sps:$4 sm:$0xff]  }
 0x193   :  { %2607 = vmatmul.mubr.bf16.gmra.mrb[52].mxu0 %v5241_v10  ;;  %2826 = vmatmul.mubr.bf16.gmra.mrb[52].mxu1 %v5241_v10 }
 0x194   :  { %v1151_v24 = vpop.f32.mrb[36].mxu0  ;;  %v1392_v16 = vmax.f32 %v1380_v21, 0.0  ;;  %v1381_v29 = vadd.f32 %v5233_v27, %v1369_v23  ;;  %2642 = vmatpush1.bf16.msra.mxu0 %v4184_v17  ;;  %2861 = vmatpush1.bf16.msra.mxu1 %v4187_v18  ;;  %v1244_v34 = vpop.f32.mrb[36].mxu1  ;;  %v4219_v17 = vld [vmem:[%s5742_s3 + $0x2ec] ss:$16 sps:$4 sm:$0xff]  }
 0x195   :  { %v1153_v47 = vpop.f32.mrb[37].mxu0  ;;  %v1309_v7 = vmax.f32 %v1151_v24, %v1244_v34  ;;  %v1246_v22 = vpop.f32.mrb[37].mxu1  ;;  %2643 = vmatprep.subr.bf16.mxu0 %v4192_v19  ;;  %2862 = vmatprep.subr.bf16.mxu1 %v4195_v20  ;;  %v4214_v20 = vld [vmem:[%s5742_s3 + $0x2e0] ss:$16 sps:$4 sm:$0xff]   ;;  %v4217_v23 = vld [vmem:[%s5742_s3 + $0x2e8] ss:$16 sps:$4 sm:$0xff]  }
 0x196   :  { %v1155_v25 = vpop.f32.mrb[38].mxu0  ;;  %v1393_v30 = vmax.f32 %v1381_v29, 0.0  ;;  %v1310_v31 = vmax.f32 %v1153_v47, %v1246_v22  ;;  %v1248_v32 = vpop.f32.mrb[38].mxu1  ;;  %v4222_v34 = vld [vmem:[%s5742_s3 + $0x304] ss:$16 sps:$4 sm:$0xff]  }
 0x197   :  { %v1157_v33 = vpop.f32.mrb[39].mxu0  ;;  %v1311_v35 = vmax.f32 %v1155_v25, %v1248_v32  ;;  %v1250_v36 = vpop.f32.mrb[39].mxu1  ;;  %v4225_v47 = vld [vmem:[%s5742_s3 + $0x30c] ss:$16 sps:$4 sm:$0xff]  }
 0x198   :  { %v5321_v37 = vpack.c.bf16 %v1393_v30, %v1392_v16  ;;  %v1370_v38 = vmax.f32 %v1309_v7, %v1310_v31  ;;  %v1312_v39 = vmax.f32 %v1157_v33, %v1250_v36  ;;  %2644 = vmatpush1.bf16.msra.mxu0 %v4190_v8  ;;  %2863 = vmatpush1.bf16.msra.mxu1 %v4193_v52  ;;  %v4220_v33 = vld [vmem:[%s5742_s3 + $0x300] ss:$16 sps:$4 sm:$0xff]  }
 0x199   :  { %2645 = vmatprep.subr.bf16.mxu0 %v4198_v26  ;;  %2864 = vmatprep.subr.bf16.mxu1 %v4201_v28 }
 0x19a   :  { %v1382_v45 = vadd.f32 %v5233_v27, %v1370_v38  ;;  %v1371_v46 = vmax.f32 %v1311_v35, %v1312_v39  ;;  %2616 = vmatprep.mubr.bf16.mxu0 %v5321_v37  ;;  %2835 = vmatprep.mubr.bf16.mxu1 %v5321_v37  ;;  %v4223_v35 = vld [vmem:[%s5742_s3 + $0x308] ss:$16 sps:$4 sm:$0xff]   ;;  %v4228_v39 = vld [vmem:[%s5742_s3 + $0x324] ss:$16 sps:$4 sm:$0xff]  }
 0x19b   :  { %2617 = vmatmul.mubr.bf16.gmra.mrb[56].mxu0 %v5245_v2  ;;  %2836 = vmatmul.mubr.bf16.gmra.mrb[56].mxu1 %v5245_v2 }
 0x19c   :  { %v1161_v49 = vpop.f32.mrb[40].mxu0  ;;  %v1394_v50 = vmax.f32 %v1382_v45, 0.0  ;;  %v1383_v53 = vadd.f32 %v5233_v27, %v1371_v46  ;;  %2646 = vmatpush1.bf16.msra.mxu0 %v4196_v40  ;;  %2865 = vmatpush1.bf16.msra.mxu1 %v4199_v41  ;;  %v1254_v55 = vpop.f32.mrb[40].mxu1  ;;  %v4231_v40 = vld [vmem:[%s5742_s3 + $0x32c] ss:$16 sps:$4 sm:$0xff]  }
 0x19d   :  { %v1163_v57 = vpop.f32.mrb[41].mxu0  ;;  %2647 = vmatprep.subr.bf16.mxu0 %v4204_v42  ;;  %2866 = vmatprep.subr.bf16.mxu1 %v4207_v43  ;;  %v1313_v60 = vmax.f32 %v1161_v49, %v1254_v55  ;;  %v1256_v61 = vpop.f32.mrb[41].mxu1  ;;  %v4226_v43 = vld [vmem:[%s5742_s3 + $0x320] ss:$16 sps:$4 sm:$0xff]   ;;  %v4229_v45 = vld [vmem:[%s5742_s3 + $0x328] ss:$16 sps:$4 sm:$0xff]  }
 0x19e   :  { %v1165_v62 = vpop.f32.mrb[42].mxu0  ;;  %v1395_v63 = vmax.f32 %v1383_v53, 0.0  ;;  %v1314_v0 = vmax.f32 %v1163_v57, %v1256_v61  ;;  %v1258_v51 = vpop.f32.mrb[42].mxu1  ;;  %v4234_v49 = vld [vmem:[%s5742_s3 + $0x344] ss:$16 sps:$4 sm:$0xff]  }
 0x19f   :  { %v1167_v1 = vpop.f32.mrb[43].mxu0  ;;  %v1315_v3 = vmax.f32 %v1165_v62, %v1258_v51  ;;  %v1260_v5 = vpop.f32.mrb[43].mxu1  ;;  %v4240_v57 = vld [vmem:[%s5742_s3 + $0x364] ss:$16 sps:$4 sm:$0xff]   ;;  %v4249_v62 = vld [vmem:[%s5742_s3 + $0x38c] ss:$16 sps:$4 sm:$0xff]  }
 0x1a0   :  { %v5353_v56 = vpack.c.bf16 %v1395_v63, %v1394_v50  ;;  %2648 = vmatpush1.bf16.msra.mxu0 %v4202_v48  ;;  %2867 = vmatpush1.bf16.msra.mxu1 %v4205_v54  ;;  %v1372_v11 = vmax.f32 %v1313_v60, %v1314_v0  ;;  %v1316_v13 = vmax.f32 %v1167_v1, %v1260_v5  ;;  %v4237_v50 = vld [vmem:[%s5742_s3 + $0x34c] ss:$16 sps:$4 sm:$0xff]   ;;  %v4232_v54 = vld [vmem:[%s5742_s3 + $0x340] ss:$16 sps:$4 sm:$0xff]   ;;  %v4241_v60 = vld [vmem:[%s5742_s3 + $0x368] ss:$16 sps:$4 sm:$0xff]  }
 0x1a1   :  { %2649 = vmatprep.subr.bf16.mxu0 %v4210_v58  ;;  %2868 = vmatprep.subr.bf16.mxu1 %v4213_v59  ;;  %v4243_v58 = vld [vmem:[%s5742_s3 + $0x36c] ss:$16 sps:$4 sm:$0xff]   ;;  %v4238_v59 = vld [vmem:[%s5742_s3 + $0x360] ss:$16 sps:$4 sm:$0xff]   ;;  %v4246_v61 = vld [vmem:[%s5742_s3 + $0x384] ss:$16 sps:$4 sm:$0xff]  }
 0x1a2   :  { %2626 = vmatprep.mubr.bf16.mxu0 %v5353_v56  ;;  %2845 = vmatprep.mubr.bf16.mxu1 %v5353_v56  ;;  %v1384_v18 = vadd.f32 %v5233_v27, %v1372_v11  ;;  %v1373_v19 = vmax.f32 %v1315_v3, %v1316_v13  ;;  %v4244_v63 = vld [vmem:[%s5742_s3 + $0x380] ss:$16 sps:$4 sm:$0xff]   ;;  %v4247_v0 = vld [vmem:[%s5742_s3 + $0x388] ss:$16 sps:$4 sm:$0xff]   ;;  %v4252_v51 = vld [vmem:[%s5742_s3 + $0x3a4] ss:$16 sps:$4 sm:$0xff]  }
 0x1a3   :  { %2627 = vmatmul.mubr.bf16.gmra.mrb[60].mxu0 %v5249_v44  ;;  %2846 = vmatmul.mubr.bf16.gmra.mrb[60].mxu1 %v5249_v44  ;;  %v4255_v1 = vld [vmem:[%s5742_s3 + $0x3ac] ss:$16 sps:$4 sm:$0xff]   ;;  %v4250_v3 = vld [vmem:[%s5742_s3 + $0x3a0] ss:$16 sps:$4 sm:$0xff]   ;;  %v4253_v5 = vld [vmem:[%s5742_s3 + $0x3a8] ss:$16 sps:$4 sm:$0xff]  }
 0x1a4   :  { %v1171_v21 = vpop.f32.mrb[44].mxu0  ;;  %2650 = vmatpush1.bf16.msra.mxu0 %v4208_v6  ;;  %2869 = vmatpush1.bf16.msra.mxu1 %v4211_v9  ;;  %v1396_v24 = vmax.f32 %v1384_v18, 0.0  ;;  %v1385_v8 = vadd.f32 %v5233_v27, %v1373_v19  ;;  %v1264_v16 = vpop.f32.mrb[44].mxu1  ;;  %v4258_v6 = vld [vmem:[%s5742_s3 + $0x3c4] ss:$16 sps:$4 sm:$0xff]  }
 0x1a5   :  { %v1173_v29 = vpop.f32.mrb[45].mxu0  ;;  %2651 = vmatprep.subr.bf16.mxu0 %v4216_v15  ;;  %2870 = vmatprep.subr.bf16.mxu1 %v4219_v17  ;;  %v1317_v52 = vmax.f32 %v1171_v21, %v1264_v16  ;;  %v1266_v7 = vpop.f32.mrb[45].mxu1  ;;  %v4261_v9 = vld [vmem:[%s5742_s3 + $0x3cc] ss:$16 sps:$4 sm:$0xff]   ;;  %v4256_v11 = vld [vmem:[%s5742_s3 + $0x3c0] ss:$16 sps:$4 sm:$0xff]  }
 0x1a6   :  { %v1175_v22 = vpop.f32.mrb[46].mxu0  ;;  %2669 = vmatprep.mubr.bf16.mxu0 %v5289_v12  ;;  %2888 = vmatprep.mubr.bf16.mxu1 %v5289_v12  ;;  %v1397_v25 = vmax.f32 %v1385_v8, 0.0  ;;  %v1318_v26 = vmax.f32 %v1173_v29, %v1266_v7  ;;  %v1268_v28 = vpop.f32.mrb[46].mxu1  ;;  %v4259_v13 = vld [vmem:[%s5742_s3 + $0x3c8] ss:$16 sps:$4 sm:$0xff]  }
 0x1a7   :  { %v1177_v30 = vpop.f32.mrb[47].mxu0  ;;  %v1319_v31 = vmax.f32 %v1175_v22, %v1268_v28  ;;  %v1270_v32 = vpop.f32.mrb[47].mxu1  ;;  %v4264_v15 = vld [vmem:[%s5742_s3 + $0x3e4] ss:$16 sps:$4 sm:$0xff]   ;;  %v4267_v17 = vld [vmem:[%s5742_s3 + $0x3ec] ss:$16 sps:$4 sm:$0xff]  }
 0x1a8   :  { %2652 = vmatpush1.bf16.msra.mxu0 %v4214_v20  ;;  %2871 = vmatpush1.bf16.msra.mxu1 %v4217_v23  ;;  %v5393_v36 = vpack.c.bf16 %v1397_v25, %v1396_v24  ;;  %v1374_v38 = vmax.f32 %v1317_v52, %v1318_v26  ;;  %v1320_v12 = vmax.f32 %v1177_v30, %v1270_v32  ;;  %v4262_v18 = vld [vmem:[%s5742_s3 + $0x3e0] ss:$16 sps:$4 sm:$0xff]   ;;  %v4265_v19 = vld [vmem:[%s5742_s3 + $0x3e8] ss:$16 sps:$4 sm:$0xff]   ;;  %v4270_v20 = vld [vmem:[%s5742_s3 + $0x404] ss:$16 sps:$4 sm:$0xff]  }
 0x1a9   :  { %2653 = vmatprep.subr.bf16.mxu0 %v4222_v34  ;;  %2872 = vmatprep.subr.bf16.mxu1 %v4225_v47  ;;  %v4273_v21 = vld [vmem:[%s5742_s3 + $0x40c] ss:$16 sps:$4 sm:$0xff]   ;;  %v4268_v23 = vld [vmem:[%s5742_s3 + $0x400] ss:$16 sps:$4 sm:$0xff]   ;;  %v4271_v24 = vld [vmem:[%s5742_s3 + $0x408] ss:$16 sps:$4 sm:$0xff]  }
 0x1aa   :  { %v1386_v41 = vadd.f32 %v5233_v27, %v1374_v38  ;;  %v1375_v42 = vmax.f32 %v1319_v31, %v1320_v12  ;;  %v4276_v8 = vld [vmem:[%s5742_s3 + $0x424] ss:$16 sps:$4 sm:$0xff]   ;;  %v4279_v16 = vld [vmem:[%s5742_s3 + $0x42c] ss:$16 sps:$4 sm:$0xff]   ;;  %v4274_v29 = vld [vmem:[%s5742_s3 + $0x420] ss:$16 sps:$4 sm:$0xff]  }
 0x1ab   :  { %v4277_v34 = vld [vmem:[%s5742_s3 + $0x428] ss:$16 sps:$4 sm:$0xff]   ;;  %v4282_v47 = vld [vmem:[%s5742_s3 + $0x444] ss:$16 sps:$4 sm:$0xff]   ;;  %v4280_v52 = vld [vmem:[%s5742_s3 + $0x440] ss:$16 sps:$4 sm:$0xff]  }
 0x1ac   :  { %2654 = vmatpush1.bf16.msra.mxu0 %v4220_v33  ;;  %2873 = vmatpush1.bf16.msra.mxu1 %v4223_v35  ;;  %v1398_v46 = vmax.f32 %v1386_v41, 0.0  ;;  %v1387_v48 = vadd.f32 %v5233_v27, %v1375_v42  ;;  %v4235_v27 = vld [vmem:[%s5742_s3 + $0x348] ss:$16 sps:$4 sm:$0xff]   ;;  %v4288_v22 = vld [vmem:[%s5742_s3 + $0x464] ss:$16 sps:$4 sm:$0xff]  }
 0x1ad   :  { %2655 = vmatprep.subr.bf16.mxu0 %v4228_v39  ;;  %2874 = vmatprep.subr.bf16.mxu1 %v4231_v40  ;;  %v4283_v7 = vld [vmem:[%s5742_s3 + $0x448] ss:$16 sps:$4 sm:$0xff]   ;;  %v4291_v25 = vld [vmem:[%s5742_s3 + $0x46c] ss:$16 sps:$4 sm:$0xff]   ;;  %v4286_v26 = vld [vmem:[%s5742_s3 + $0x460] ss:$16 sps:$4 sm:$0xff]  }
 0x1ae   :  { %v1399_v53 = vmax.f32 %v1387_v48, 0.0  ;;  %v4289_v28 = vld [vmem:[%s5742_s3 + $0x468] ss:$16 sps:$4 sm:$0xff]   ;;  %v4294_v30 = vld [vmem:[%s5742_s3 + $0x484] ss:$16 sps:$4 sm:$0xff]  }
 0x1af   :  { %v4297_v31 = vld [vmem:[%s5742_s3 + $0x48c] ss:$16 sps:$4 sm:$0xff]   ;;  %v4292_v32 = vld [vmem:[%s5742_s3 + $0x480] ss:$16 sps:$4 sm:$0xff]   ;;  %v4295_v33 = vld [vmem:[%s5742_s3 + $0x488] ss:$16 sps:$4 sm:$0xff]  }
 0x1b0   :  { %2656 = vmatpush1.bf16.msra.mxu0 %v4226_v43  ;;  %2875 = vmatpush1.bf16.msra.mxu1 %v4229_v45  ;;  %v5421_v55 = vpack.c.bf16 %v1399_v53, %v1398_v46  ;;  %v4300_v35 = vld [vmem:[%s5742_s3 + $0x4a4] ss:$16 sps:$4 sm:$0xff]   ;;  %v4303_v38 = vld [vmem:[%s5742_s3 + $0x4ac] ss:$16 sps:$4 sm:$0xff]   ;;  %v4298_v12 = vld [vmem:[%s5742_s3 + $0x4a0] ss:$16 sps:$4 sm:$0xff]  }
 0x1b1   :  { %2657 = vmatprep.subr.bf16.mxu0 %v4234_v49  ;;  %2876 = vmatprep.subr.bf16.mxu1 %v4237_v50  ;;  %v4301_v39 = vld [vmem:[%s5742_s3 + $0x4a8] ss:$16 sps:$4 sm:$0xff]   ;;  %v4306_v40 = vld [vmem:[%s5742_s3 + $0x4c4] ss:$16 sps:$4 sm:$0xff]   ;;  %v4309_v41 = vld [vmem:[%s5742_s3 + $0x4cc] ss:$16 sps:$4 sm:$0xff]  }
 0x1b2   :  { %v4304_v42 = vld [vmem:[%s5742_s3 + $0x4c0] ss:$16 sps:$4 sm:$0xff]   ;;  %v4307_v43 = vld [vmem:[%s5742_s3 + $0x4c8] ss:$16 sps:$4 sm:$0xff]   ;;  %v4312_v45 = vld [vmem:[%s5742_s3 + $0x4e4] ss:$16 sps:$4 sm:$0xff]  }
 0x1b3   :  { %v4315_v46 = vld [vmem:[%s5742_s3 + $0x4ec] ss:$16 sps:$4 sm:$0xff]   ;;  %v4310_v48 = vld [vmem:[%s5742_s3 + $0x4e0] ss:$16 sps:$4 sm:$0xff]   ;;  %v4313_v49 = vld [vmem:[%s5742_s3 + $0x4e8] ss:$16 sps:$4 sm:$0xff]  }
 0x1b4   :  { %2658 = vmatpush1.bf16.msra.mxu0 %v4232_v54  ;;  %2877 = vmatpush1.bf16.msra.mxu1 %v4235_v27  ;;  %v4318_v50 = vld [vmem:[%s5742_s3 + $0x504] ss:$16 sps:$4 sm:$0xff]   ;;  %v4321_v53 = vld [vmem:[%s5742_s3 + $0x50c] ss:$16 sps:$4 sm:$0xff]   ;;  %v4316_v54 = vld [vmem:[%s5742_s3 + $0x500] ss:$16 sps:$4 sm:$0xff]  }
 0x1b5   :  { %2659 = vmatprep.subr.bf16.mxu0 %v4240_v57  ;;  %2878 = vmatprep.subr.bf16.mxu1 %v4243_v58  ;;  %v4324_v27 = vld [vmem:[%s5742_s3 + $0x524] ss:$16 sps:$4 sm:$0xff]   ;;  %v4327_v57 = vld [vmem:[%s5742_s3 + $0x52c] ss:$16 sps:$4 sm:$0xff]   ;;  %v4322_v58 = vld [vmem:[%s5742_s3 + $0x520] ss:$16 sps:$4 sm:$0xff]  }
 0x1b8   :  { %2660 = vmatpush1.bf16.msra.mxu0 %v4238_v59  ;;  %2879 = vmatpush1.bf16.msra.mxu1 %v4241_v60  ;;  %v4325_v59 = vld [vmem:[%s5742_s3 + $0x528] ss:$16 sps:$4 sm:$0xff]   ;;  %v4330_v60 = vld [vmem:[%s5742_s3 + $0x544] ss:$16 sps:$4 sm:$0xff]  }
 0x1b9   :  { %2661 = vmatprep.subr.bf16.mxu0 %v4246_v61  ;;  %2880 = vmatprep.subr.bf16.mxu1 %v4249_v62  ;;  %v4333_v61 = vld [vmem:[%s5742_s3 + $0x54c] ss:$16 sps:$4 sm:$0xff]   ;;  %v4328_v62 = vld [vmem:[%s5742_s3 + $0x540] ss:$16 sps:$4 sm:$0xff]  }
 0x1bc   :  { %2662 = vmatpush1.bf16.msra.mxu0 %v4244_v63  ;;  %2881 = vmatpush1.bf16.msra.mxu1 %v4247_v0  ;;  %v4331_v63 = vld [vmem:[%s5742_s3 + $0x548] ss:$16 sps:$4 sm:$0xff]   ;;  %v4336_v0 = vld [vmem:[%s5742_s3 + $0x564] ss:$16 sps:$4 sm:$0xff]  }
 0x1bd   :  { %2663 = vmatprep.subr.bf16.mxu0 %v4252_v51  ;;  %2882 = vmatprep.subr.bf16.mxu1 %v4255_v1  ;;  %v4339_v51 = vld [vmem:[%s5742_s3 + $0x56c] ss:$16 sps:$4 sm:$0xff]   ;;  %v4334_v1 = vld [vmem:[%s5742_s3 + $0x560] ss:$16 sps:$4 sm:$0xff]  }
 0x1c0   :  { %2664 = vmatpush1.bf16.msra.mxu0 %v4250_v3  ;;  %2883 = vmatpush1.bf16.msra.mxu1 %v4253_v5  ;;  %v4337_v3 = vld [vmem:[%s5742_s3 + $0x568] ss:$16 sps:$4 sm:$0xff]   ;;  %v4342_v5 = vld [vmem:[%s5742_s3 + $0x584] ss:$16 sps:$4 sm:$0xff]  }
 0x1c1   :  { %2665 = vmatprep.subr.bf16.mxu0 %v4258_v6  ;;  %2884 = vmatprep.subr.bf16.mxu1 %v4261_v9  ;;  %v4345_v6 = vld [vmem:[%s5742_s3 + $0x58c] ss:$16 sps:$4 sm:$0xff]   ;;  %v4340_v9 = vld [vmem:[%s5742_s3 + $0x580] ss:$16 sps:$4 sm:$0xff]  }
 0x1c4   :  { %2666 = vmatpush1.bf16.msra.mxu0 %v4256_v11  ;;  %2885 = vmatpush1.bf16.msra.mxu1 %v4259_v13  ;;  %v4343_v11 = vld [vmem:[%s5742_s3 + $0x588] ss:$16 sps:$4 sm:$0xff]   ;;  %v4348_v13 = vld [vmem:[%s5742_s3 + $0x5a4] ss:$16 sps:$4 sm:$0xff]  }
 0x1c5   :  { %2667 = vmatprep.subr.bf16.mxu0 %v4264_v15  ;;  %2886 = vmatprep.subr.bf16.mxu1 %v4267_v17  ;;  %v4351_v15 = vld [vmem:[%s5742_s3 + $0x5ac] ss:$16 sps:$4 sm:$0xff]   ;;  %v4346_v17 = vld [vmem:[%s5742_s3 + $0x5a0] ss:$16 sps:$4 sm:$0xff]  }
 0x1c8   :  { %2668 = vmatpush1.bf16.msra.mxu0 %v4262_v18  ;;  %2887 = vmatpush1.bf16.msra.mxu1 %v4265_v19  ;;  %v4349_v18 = vld [vmem:[%s5742_s3 + $0x5a8] ss:$16 sps:$4 sm:$0xff]   ;;  %v4354_v19 = vld [vmem:[%s5742_s3 + $0x5c4] ss:$16 sps:$4 sm:$0xff]  }
 0x1c9   :  { %2710 = vmatprep.subr.bf16.mxu0 %v4270_v20  ;;  %2929 = vmatprep.subr.bf16.mxu1 %v4273_v21  ;;  %v4357_v20 = vld [vmem:[%s5742_s3 + $0x5cc] ss:$16 sps:$4 sm:$0xff]   ;;  %v4352_v21 = vld [vmem:[%s5742_s3 + $0x5c0] ss:$16 sps:$4 sm:$0xff]  }
 0x1cb   :  { %2670 = vmatmul.mubr.bf16.vlgmr.msra.gmra.mrb[48].mxu0 %v5241_v10  ;;  %2889 = vmatmul.mubr.bf16.vlgmr.msra.gmra.mrb[48].mxu1 %v5241_v10  ;;  %v4285_v10 = vld [vmem:[%s5742_s3 + $0x44c] ss:$16 sps:$4 sm:$0xff]  }
 0x1cc   :  { %2679 = vmatprep.mubr.bf16.mxu0 %v5321_v37  ;;  %2711 = vmatpush1.bf16.msra.mxu0 %v4268_v23  ;;  %v4355_v23 = vld [vmem:[%s5742_s3 + $0x5c8] ss:$16 sps:$4 sm:$0xff]  }
 0x1cd   :  { %2898 = vmatprep.mubr.bf16.mxu1 %v5321_v37  ;;  %2930 = vmatpush1.bf16.msra.mxu1 %v4271_v24  ;;  %v4360_v24 = vld [vmem:[%s5742_s3 + $0x5e4] ss:$16 sps:$4 sm:$0xff]  }
 0x1ce   :  { %2712 = vmatprep.subr.bf16.mxu0 %v4276_v8  ;;  %2931 = vmatprep.subr.bf16.mxu1 %v4279_v16  ;;  %v4363_v8 = vld [vmem:[%s5742_s3 + $0x5ec] ss:$16 sps:$4 sm:$0xff]   ;;  %v4358_v16 = vld [vmem:[%s5742_s3 + $0x5e0] ss:$16 sps:$4 sm:$0xff]  }
 0x1d0   :  { %2713 = vmatpush1.bf16.msra.mxu0 %v4274_v29  ;;  %v4361_v29 = vld [vmem:[%s5742_s3 + $0x5e8] ss:$16 sps:$4 sm:$0xff]  }
 0x1d1   :  { %2932 = vmatpush1.bf16.msra.mxu1 %v4277_v34  ;;  %2714 = vmatprep.subr.bf16.mxu0 %v4282_v47  ;;  %v4364_v34 = vld [vmem:[#allocation2 + $0x40] sm:$0xff]  }
 0x1d2   :  { %2933 = vmatprep.subr.bf16.mxu1 %v4285_v10  ;;  %v4365_v47 = vld [vmem:[#allocation2] sm:$0xff]   ;;  %v4366_v10 = vld [vmem:[#allocation2 + $0x48] sm:$0xff]  }
 0x1d3   :  { %2680 = vmatmul.mubr.bf16.gmra.mrb[52].mxu0 %v5245_v2  ;;  %2899 = vmatmul.mubr.bf16.gmra.mrb[52].mxu1 %v5245_v2 }
 0x1d4   :  { %2689 = vmatprep.mubr.bf16.mxu0 %v5353_v56  ;;  %2715 = vmatpush1.bf16.msra.mxu0 %v4280_v52  ;;  %v4367_v52 = vld [vmem:[#allocation2 + $0x8] sm:$0xff]  }
 0x1d5   :  { %2908 = vmatprep.mubr.bf16.mxu1 %v5353_v56  ;;  %2934 = vmatpush1.bf16.msra.mxu1 %v4283_v7  ;;  %v4368_v7 = vld [vmem:[#allocation2 + $0x50] sm:$0xff]  }
 0x1d6   :  { %2716 = vmatprep.subr.bf16.mxu0 %v4288_v22  ;;  %2935 = vmatprep.subr.bf16.mxu1 %v4291_v25  ;;  %v4372_v22 = vld [vmem:[#allocation2 + $0xc0] sm:$0xff]  }
 0x1d7   :  { %v4374_v25 = vld [vmem:[#allocation2 + $0x80] sm:$0xff]  }
 0x1d8   :  { %2717 = vmatpush1.bf16.msra.mxu0 %v4286_v26  ;;  %v4375_v26 = vld [vmem:[#allocation2 + $0x20] sm:$0xff]  }
 0x1d9   :  { %2936 = vmatpush1.bf16.msra.mxu1 %v4289_v28  ;;  %2718 = vmatprep.subr.bf16.mxu0 %v4294_v30  ;;  %v4378_v28 = vld [vmem:[#allocation2 + $0x88] sm:$0xff]  }
 0x1da   :  { %2937 = vmatprep.subr.bf16.mxu1 %v4297_v31  ;;  %v4379_v30 = vld [vmem:[#allocation2 + $0x28] sm:$0xff]   ;;  %v4381_v31 = vld [vmem:[#allocation2 + $0x70] sm:$0xff]  }
 0x1db   :  { %2690 = vmatmul.mubr.bf16.gmra.mrb[56].mxu0 %v5249_v44  ;;  %2909 = vmatmul.mubr.bf16.gmra.mrb[56].mxu1 %v5249_v44 }
 0x1dc   :  { %2719 = vmatpush1.bf16.msra.mxu0 %v4292_v32  ;;  %2699 = vmatprep.mubr.bf16.mxu0 %v5393_v36  ;;  %v4382_v32 = vld [vmem:[#allocation2 + $0x90] sm:$0xff]  }
 0x1dd   :  { %2938 = vmatpush1.bf16.msra.mxu1 %v4295_v33  ;;  %2720 = vmatprep.subr.bf16.mxu0 %v4300_v35  ;;  %v4383_v33 = vld [vmem:[#allocation2 + $0x30] sm:$0xff]   ;;  %v4384_v35 = vld [vmem:[#allocation2 + $0xd8] sm:$0xff]  }
 0x1de   :  { %2939 = vmatprep.subr.bf16.mxu1 %v4303_v38  ;;  %2918 = vmatprep.mubr.bf16.mxu1 %v5393_v36  ;;  %v4385_v38 = vld [vmem:[#allocation2 + $0x78] sm:$0xff]  }
 0x1e0   :  { %2721 = vmatpush1.bf16.msra.mxu0 %v4298_v12  ;;  %v4386_v12 = vld [vmem:[#allocation2 + $0x98] sm:$0xff]  }
 0x1e1   :  { %2940 = vmatpush1.bf16.msra.mxu1 %v4301_v39  ;;  %2722 = vmatprep.subr.bf16.mxu0 %v4306_v40  ;;  %v4387_v39 = vld [vmem:[#allocation2 + $0x38] sm:$0xff]   ;;  %v4388_v40 = vld [vmem:[#allocation2 + $0xe0] sm:$0xff]  }
 0x1e2   :  { %2941 = vmatprep.subr.bf16.mxu1 %v4309_v41  ;;  %v4389_v41 = vld [vmem:[#allocation2 + $0xa0] sm:$0xff]  }
 0x1e3   :  { %2700 = vmatmul.mubr.bf16.gmra.mrb[60].mxu0 %v5253_v4  ;;  %2919 = vmatmul.mubr.bf16.gmra.mrb[60].mxu1 %v5253_v4 }
 0x1e4   :  { %2723 = vmatpush1.bf16.msra.mxu0 %v4304_v42  ;;  %2742 = vmatprep.mubr.bf16.mxu0 %v5321_v37  ;;  %v4390_v42 = vld [vmem:[#allocation2 + $0xe8] sm:$0xff]  }
 0x1e5   :  { %2942 = vmatpush1.bf16.msra.mxu1 %v4307_v43  ;;  %2961 = vmatprep.mubr.bf16.mxu1 %v5321_v37  ;;  %v4319_v37 = vld [vmem:[%s5742_s3 + $0x508] ss:$16 sps:$4 sm:$0xff]  }
 0x1e6   :  { %2724 = vmatprep.subr.bf16.mxu0 %v4312_v45  ;;  %2943 = vmatprep.subr.bf16.mxu1 %v4315_v46  ;;  %v4391_v43 = vld [vmem:[#allocation2 + $0xa8] sm:$0xff]   ;;  %v4392_v45 = vld [vmem:[#allocation2 + $0xf0] sm:$0xff]  }
 0x1e7   :  { %v4393_v46 = vld [vmem:[#allocation2 + $0xb0] sm:$0xff]  }
 0x1e8   :  { %2725 = vmatpush1.bf16.msra.mxu0 %v4310_v48  ;;  %v4394_v48 = vld [vmem:[#allocation2 + $0xf8] sm:$0xff]  }
 0x1e9   :  { %2944 = vmatpush1.bf16.msra.mxu1 %v4313_v49  ;;  %2726 = vmatprep.subr.bf16.mxu0 %v4318_v50  ;;  %v4395_v49 = vld [vmem:[#allocation2 + $0xb8] sm:$0xff]   ;;  %v4464_v50 = vmov 0.0  }
 0x1ea   :  { %2945 = vmatprep.subr.bf16.mxu1 %v4321_v53 }
 0x1ec   :  { %2727 = vmatpush1.bf16.msra.mxu0 %v4316_v54 }
 0x1ed   :  { %2946 = vmatpush1.bf16.msra.mxu1 %v4319_v37  ;;  %2728 = vmatprep.subr.bf16.mxu0 %v4324_v27 }
 0x1ee   :  { %2947 = vmatprep.subr.bf16.mxu1 %v4327_v57 }
 0x1f0   :  { %2729 = vmatpush1.bf16.msra.mxu0 %v4322_v58 }
 0x1f1   :  { %2948 = vmatpush1.bf16.msra.mxu1 %v4325_v59  ;;  %2730 = vmatprep.subr.bf16.mxu0 %v4330_v60 }
 0x1f2   :  { %2949 = vmatprep.subr.bf16.mxu1 %v4333_v61 }
 0x1f4   :  { %2731 = vmatpush1.bf16.msra.mxu0 %v4328_v62  ;;  %v5709_v62 = vld [vmem:[%s5743_s4] ss:$0 sm:$0xff] }
 0x1f5   :  { %2950 = vmatpush1.bf16.msra.mxu1 %v4331_v63  ;;  %2732 = vmatprep.subr.bf16.mxu0 %v4336_v0 }
 0x1f6   :  { %2951 = vmatprep.subr.bf16.mxu1 %v4339_v51 }
 0x1f8   :  { %2733 = vmatpush1.bf16.msra.mxu0 %v4334_v1 }
 0x1f9   :  { %2952 = vmatpush1.bf16.msra.mxu1 %v4337_v3  ;;  %2734 = vmatprep.subr.bf16.mxu0 %v4342_v5 }
 0x1fa   :  { %2953 = vmatprep.subr.bf16.mxu1 %v4345_v6 }
 0x1fc   :  { %2735 = vmatpush1.bf16.msra.mxu0 %v4340_v9 }
 0x1fd   :  { %2954 = vmatpush1.bf16.msra.mxu1 %v4343_v11  ;;  %2736 = vmatprep.subr.bf16.mxu0 %v4348_v13 }
 0x1fe   :  { %2955 = vmatprep.subr.bf16.mxu1 %v4351_v15 }
 0x200   :  { %2737 = vmatpush1.bf16.msra.mxu0 %v4346_v17 }
 0x201   :  { %2956 = vmatpush1.bf16.msra.mxu1 %v4349_v18  ;;  %2738 = vmatprep.subr.bf16.mxu0 %v4354_v19 }
 0x202   :  { %2957 = vmatprep.subr.bf16.mxu1 %v4357_v20 }
 0x204   :  { %2739 = vmatpush1.bf16.msra.mxu0 %v4352_v21 }
 0x205   :  { %2958 = vmatpush1.bf16.msra.mxu1 %v4355_v23  ;;  %2740 = vmatprep.subr.bf16.mxu0 %v4360_v24 }
 0x206   :  { %2959 = vmatprep.subr.bf16.mxu1 %v4363_v8 }
 0x208   :  { %2741 = vmatpush1.bf16.msra.mxu0 %v4358_v16 }
 0x209   :  { %2960 = vmatpush1.bf16.msra.mxu1 %v4361_v29  ;;  %3915 = vmatprep.subr.bf16.mxu0 %v4364_v34 }
 0x20a   :  { %3937 = vmatprep.subr.bf16.mxu1 %v4372_v22 }
 0x20b   :  { %2743 = vmatmul.mubr.bf16.vlgmr.msra.gmra.mrb[48].mxu0 %v5245_v2 }
 0x20c   :  { %2962 = vmatmul.mubr.bf16.vlgmr.msra.gmra.mrb[48].mxu1 %v5245_v2  ;;  %2752 = vmatprep.mubr.bf16.mxu0 %v5353_v56  ;;  %v4369_v2 = vld [vmem:[#allocation2 + $0x10] sm:$0xff]  }
 0x20d   :  { %2971 = vmatprep.mubr.bf16.mxu1 %v5353_v56  ;;  %3916 = vmatpush3.bf16.msra.mxu0 %v4365_v47  ;;  %v4370_v56 = vld [vmem:[#allocation2 + $0x58] sm:$0xff]  }
 0x20e   :  { %3917 = vmatprep.subr.bf16.mxu0 %v4366_v10  ;;  %3938 = vmatpush3.bf16.msra.mxu1 %v4374_v25 }
 0x211   :  { %3918 = vmatpush3.bf16.msra.mxu0 %v4367_v52 }
 0x212   :  { %3919 = vmatprep.subr.bf16.mxu0 %v4368_v7 }
 0x213   :  { %2753 = vmatmul.mubr.bf16.gmra.mrb[52].mxu0 %v5249_v44 }
 0x214   :  { %2972 = vmatmul.mubr.bf16.gmra.mrb[52].mxu1 %v5249_v44  ;;  %2762 = vmatprep.mubr.bf16.mxu0 %v5393_v36  ;;  %v4371_v44 = vld [vmem:[#allocation2 + $0x18] sm:$0xff]  }
 0x215   :  { %2981 = vmatprep.mubr.bf16.mxu1 %v5393_v36  ;;  %3920 = vmatpush3.bf16.msra.mxu0 %v4369_v2  ;;  %v4373_v36 = vld [vmem:[#allocation2 + $0x60] sm:$0xff]  }
 0x216   :  { %3921 = vmatprep.subr.bf16.mxu0 %v4370_v56 }
 0x219   :  { %3922 = vmatpush3.bf16.msra.mxu0 %v4371_v44 }
 0x21a   :  { %3923 = vmatprep.subr.bf16.mxu0 %v4373_v36 }
 0x21b   :  { %2763 = vmatmul.mubr.bf16.gmra.mrb[56].mxu0 %v5253_v4 }
 0x21c   :  { %2982 = vmatmul.mubr.bf16.gmra.mrb[56].mxu1 %v5253_v4  ;;  %2772 = vmatprep.mubr.bf16.mxu0 %v5421_v55  ;;  %v4376_v4 = vld [vmem:[#allocation2 + $0xc8] sm:$0xff]  }
 0x21d   :  { %2991 = vmatprep.mubr.bf16.mxu1 %v5421_v55  ;;  %3924 = vmatpush3.bf16.msra.mxu0 %v4375_v26  ;;  %v4377_v55 = vld [vmem:[#allocation2 + $0x68] sm:$0xff]  }
 0x21e   :  { %3939 = vmatprep.subr.bf16.mxu1 %v4376_v4  ;;  %3925 = vmatprep.subr.bf16.mxu0 %v4377_v55 }
 0x21f   :  { %3940 = vmatpush3.bf16.msra.mxu1 %v4378_v28 }
 0x221   :  { %3926 = vmatpush3.bf16.msra.mxu0 %v4379_v30 }
 0x222   :  { %3927 = vmatprep.subr.bf16.mxu0 %v4381_v31 }
 0x223   :  { %2773 = vmatmul.mubr.bf16.gmra.mrb[60].mxu0 %v5257_v14 }
 0x224   :  { %2992 = vmatmul.mubr.bf16.gmra.mrb[60].mxu1 %v5257_v14  ;;  %v4380_v14 = vld [vmem:[#allocation2 + $0xd0] sm:$0xff]  }
 0x225   :  { %3941 = vmatprep.subr.bf16.mxu1 %v4380_v14  ;;  %3928 = vmatpush3.bf16.msra.mxu0 %v4383_v33 }
 0x226   :  { %3942 = vmatpush3.bf16.msra.mxu1 %v4382_v32  ;;  %3929 = vmatprep.subr.bf16.mxu0 %v4385_v38  ;;  %v4396_v38 = vld [vmem:[#allocation4] sm:$0xff]  }
 0x227   :  { %3943 = vmatprep.subr.bf16.mxu1 %v4384_v35 }
 0x229   :  { %3930 = vmatpush3.bf16.msra.mxu0 %v4387_v39 }
 0x22a   :  { %3944 = vmatpush3.bf16.msra.mxu1 %v4386_v12  ;;  %3968 = vmatprep.subr.bf16.mxu0 %v4464_v50 }
 0x22b   :  { %3945 = vmatprep.subr.bf16.mxu1 %v4388_v40 }
 0x22e   :  { %3946 = vmatpush3.bf16.msra.mxu1 %v4389_v41 }
 0x22f   :  { %3947 = vmatprep.subr.bf16.mxu1 %v4390_v42 }
 0x232   :  { %3948 = vmatpush3.bf16.msra.mxu1 %v4391_v43 }
 0x233   :  { %3949 = vmatprep.subr.bf16.mxu1 %v4392_v45 }
 0x236   :  { %3950 = vmatpush3.bf16.msra.mxu1 %v4393_v46 }
 0x237   :  { %3951 = vmatprep.subr.bf16.mxu1 %v4394_v48 }
 0x23a   :  { %3952 = vmatpush3.bf16.msra.mxu1 %v4395_v49 }
 0x2de   :  { %v2744_v53 = vpop.f32.mrb[48].mxu0 }
 0x2df   :  { %v2963_v54 = vpop.f32.mrb[48].mxu1  ;;  %v2746_v37 = vpop.f32.mrb[49].mxu0 }
 0x2e0   :  { %v3002_v27 = vmax.f32 %v2744_v53, %v2963_v54  ;;  %v2965_v57 = vpop.f32.mrb[49].mxu1  ;;  %v2748_v58 = vpop.f32.mrb[50].mxu0 }
 0x2e1   :  { %v3003_v59 = vmax.f32 %v2746_v37, %v2965_v57  ;;  %v2967_v60 = vpop.f32.mrb[50].mxu1  ;;  %v2750_v61 = vpop.f32.mrb[51].mxu0 }
 0x2e2   :  { %v3004_v63 = vmax.f32 %v2748_v58, %v2967_v60  ;;  %v2969_v0 = vpop.f32.mrb[51].mxu1 }
 0x2e3   :  { %v3018_v51 = vmax.f32 %v3002_v27, %v3003_v59  ;;  %v3005_v1 = vmax.f32 %v2750_v61, %v2969_v0 }
 0x2e5   :  { %v3033_v3 = vadd.f32 %v5709_v62, %v3018_v51  ;;  %v3019_v5 = vmax.f32 %v3004_v63, %v3005_v1 }
 0x2e6   :  { %v2754_v6 = vpop.f32.mrb[52].mxu0 }
 0x2e7   :  { %v3034_v9 = vadd.f32 %v5709_v62, %v3019_v5  ;;  %v2973_v11 = vpop.f32.mrb[52].mxu1  ;;  %v2756_v13 = vpop.f32.mrb[53].mxu0  ;;  %v3041_v19 = vmax.f32 %v3033_v3, 0.0 }
 0x2e8   :  { %v3006_v15 = vmax.f32 %v2754_v6, %v2973_v11  ;;  %v2975_v17 = vpop.f32.mrb[53].mxu1  ;;  %v2758_v18 = vpop.f32.mrb[54].mxu0  ;;  %v4397_v6 = vld [vmem:[#allocation4 + $0x8] sm:$0xff]   ;;  %v4399_v11 = vld [vmem:[#allocation4 + $0x18] sm:$0xff]  }
 0x2e9   :  { %v3042_v20 = vmax.f32 %v3034_v9, 0.0  ;;  %v3007_v21 = vmax.f32 %v2756_v13, %v2975_v17  ;;  %v2977_v23 = vpop.f32.mrb[54].mxu1  ;;  %v2760_v24 = vpop.f32.mrb[55].mxu0  ;;  %v4398_v9 = vld [vmem:[#allocation4 + $0x10] sm:$0xff]   ;;  %v4400_v13 = vld [vmem:[#allocation4 + $0x20] sm:$0xff]   ;;  %v4403_v17 = vld [vmem:[#allocation4 + $0x38] sm:$0xff]  }
 0x2ea   :  { %v3008_v8 = vmax.f32 %v2758_v18, %v2977_v23  ;;  %v2979_v16 = vpop.f32.mrb[55].mxu1 }
 0x2eb   :  { %v3049_v29 = vpack.c.bf16 %v3042_v20, %v3041_v19  ;;  %v3020_v34 = vmax.f32 %v3006_v15, %v3007_v21  ;;  %v3009_v47 = vmax.f32 %v2760_v24, %v2979_v16  ;;  %v4402_v15 = vld [vmem:[#allocation4 + $0x30] sm:$0xff]  }
 0x2ed   :  { %v3035_v10 = vadd.f32 %v5709_v62, %v3020_v34  ;;  %v3021_v52 = vmax.f32 %v3008_v8, %v3009_v47  ;;  %v3873_v8 = vld [vmem:[%s5745_s6] ss:$0 sm:$0xff] }
 0x2ee   :  { %v2764_v7 = vpop.f32.mrb[56].mxu0 }
 0x2ef   :  { %v3036_v2 = vadd.f32 %v5709_v62, %v3021_v52  ;;  %v2983_v56 = vpop.f32.mrb[56].mxu1  ;;  %v2766_v44 = vpop.f32.mrb[57].mxu0  ;;  %v3043_v26 = vmax.f32 %v3035_v10, 0.0 }
 0x2f0   :  { %v3010_v22 = vmax.f32 %v2764_v7, %v2983_v56  ;;  %v2985_v36 = vpop.f32.mrb[57].mxu1  ;;  %v2768_v25 = vpop.f32.mrb[58].mxu0 }
 0x2f1   :  { %v3044_v4 = vmax.f32 %v3036_v2, 0.0  ;;  %v3011_v55 = vmax.f32 %v2766_v44, %v2985_v36  ;;  %v2987_v28 = vpop.f32.mrb[58].mxu1  ;;  %v2770_v30 = vpop.f32.mrb[59].mxu0 }
 0x2f2   :  { %v3012_v14 = vmax.f32 %v2768_v25, %v2987_v28  ;;  %v2989_v31 = vpop.f32.mrb[59].mxu1  ;;  %v3906_v25 = vld [vmem:[%s5747_s8] ss:$0 sm:$0xff] }
 0x2f3   :  { %v3022_v32 = vmax.f32 %v3010_v22, %v3011_v55  ;;  %v3013_v33 = vmax.f32 %v2770_v30, %v2989_v31  ;;  %v3050_v35 = vpack.c.bf16 %v3044_v4, %v3043_v26 }
 0x2f5   :  { %v3037_v12 = vadd.f32 %v5709_v62, %v3022_v32  ;;  %v3023_v39 = vmax.f32 %v3012_v14, %v3013_v33  ;;  %3348 = vmatprep.mubr.bf16.mxu0 %v3050_v35 }
 0x2f6   :  { %3349 = vmatmul.mubr.bf16.vlgmr.msra.gmra.mrb[64].mxu0 %v3049_v29  ;;  %v2774_v40 = vpop.f32.mrb[60].mxu0 }
 0x2f7   :  { %v3038_v41 = vadd.f32 %v5709_v62, %v3023_v39  ;;  %v2993_v42 = vpop.f32.mrb[60].mxu1  ;;  %v2776_v43 = vpop.f32.mrb[61].mxu0  ;;  %3969 = vmatpush3.bf16.msra.mxu0 %v4396_v38  ;;  %v3045_v49 = vmax.f32 %v3037_v12, 0.0  ;;  %3984 = vmatprep.mubr.msk.bf16.mxu0 %vm4465_vm0, %v4464_v50 }
 0x2f8   :  { %v3014_v45 = vmax.f32 %v2774_v40, %v2993_v42  ;;  %v2995_v46 = vpop.f32.mrb[61].mxu1  ;;  %v2778_v48 = vpop.f32.mrb[62].mxu0  ;;  %3970 = vmatprep.subr.bf16.mxu0 %v4464_v50 }
 0x2f9   :  { %v3046_v53 = vmax.f32 %v3038_v41, 0.0  ;;  %v3015_v54 = vmax.f32 %v2776_v43, %v2995_v46  ;;  %v2997_v37 = vpop.f32.mrb[62].mxu1  ;;  %v2780_v27 = vpop.f32.mrb[63].mxu0 }
 0x2fa   :  { %v3016_v57 = vmax.f32 %v2778_v48, %v2997_v37  ;;  %v2999_v58 = vpop.f32.mrb[63].mxu1 }
 0x2fb   :  { %v3051_v59 = vpack.c.bf16 %v3046_v53, %v3045_v49  ;;  %v3024_v60 = vmax.f32 %v3014_v45, %v3015_v54  ;;  %v3017_v61 = vmax.f32 %v2780_v27, %v2999_v58  ;;  %3971 = vmatpush3.bf16.msra.mxu0 %v4397_v6 }
 0x2fc   :  { %3972 = vmatprep.subr.bf16.mxu0 %v4464_v50 }
 0x2fd   :  { %v3039_v63 = vadd.f32 %v5709_v62, %v3024_v60  ;;  %v3025_v0 = vmax.f32 %v3016_v57, %v3017_v61 }
 0x2ff   :  { %v3040_v51 = vadd.f32 %v5709_v62, %v3025_v0  ;;  %v3047_v1 = vmax.f32 %v3039_v63, 0.0  ;;  %3973 = vmatpush3.bf16.msra.mxu0 %v4398_v9  ;;  %v4401_v62 = vld [vmem:[#allocation4 + $0x28] sm:$0xff]  }
 0x300   :  { %3974 = vmatprep.subr.bf16.mxu0 %v4464_v50 }
 0x301   :  { %v3048_v3 = vmax.f32 %v3040_v51, 0.0 }
 0x303   :  { %v3052_v5 = vpack.c.bf16 %v3048_v3, %v3047_v1  ;;  %3975 = vmatpush3.bf16.msra.mxu0 %v4399_v11 }
 0x304   :  { %3976 = vmatprep.subr.bf16.mxu0 %v4464_v50 }
 0x305   :  { %3389 = vmatprep.mubr.bf16.mxu1 %v3052_v5 }
 0x306   :  { %3390 = vmatmul.mubr.bf16.vlgmr.msra.gmra.mrb[64].mxu1 %v3051_v59 }
 0x307   :  { %3977 = vmatpush3.bf16.msra.mxu0 %v4400_v13 }
 0x308   :  { %3978 = vmatprep.subr.bf16.mxu0 %v4464_v50 }
 0x30b   :  { %3979 = vmatpush3.bf16.msra.mxu0 %v4401_v62 }
 0x30c   :  { %3980 = vmatprep.subr.bf16.mxu0 %v4464_v50 }
 0x30f   :  { %3981 = vmatpush3.bf16.msra.mxu0 %v4402_v15 }
 0x310   :  { %3982 = vmatprep.subr.bf16.mxu0 %v4464_v50 }
 0x313   :  { %3983 = vmatpush3.bf16.msra.mxu0 %v4403_v17 }
 0x3c9   :  { %v3931_v18 = vpop.f32.mrb[64].mxu0 }
 0x3ca   :  { %v3932_v19 = vpop.f32.mrb[65].mxu0 }
 0x3cb   :  { %v3933_v20 = vadd.f32 %v3932_v19, %v3931_v18  ;;  %v3934_v21 = vpop.f32.mrb[66].mxu0 }
 0x3cc   :  { %v3935_v23 = vpop.f32.mrb[67].mxu0 }
 0x3cd   :  { %v3936_v24 = vadd.f32 %v3935_v23, %v3934_v21  ;;  %v3351_v34 = vadd.f32 %v3933_v20, %v3873_v8 }
 0x3cf   :  { %v3354_v7 = vadd.f32 %v3936_v24, %v3873_v8 }
 0x3d9   :  { %v3953_v16 = vpop.f32.mrb[64].mxu1 }
 0x3da   :  { %v3954_v29 = vpop.f32.mrb[65].mxu1 }
 0x3db   :  { %v3955_v47 = vadd.f32 %v3954_v29, %v3953_v16  ;;  %v3956_v10 = vpop.f32.mrb[66].mxu1 }
 0x3dc   :  { %v3957_v52 = vpop.f32.mrb[67].mxu1 }
 0x3dd   :  { %v3392_v2 = vadd.f32 %v3955_v47, %v3351_v34  ;;  %v3958_v56 = vadd.f32 %v3957_v52, %v3956_v10 }
 0x3df   :  { %v3395_v50 = vadd.f32 %v3958_v56, %v3354_v7  ;;  %v3398_v44 = vmax.f32 %v3392_v2, 0.0 }
 0x3e1   :  { %v3399_v22 = vmax.f32 %v3395_v50, 0.0 }
 0x3e3   :  { %v3400_v36 = vpack.c.bf16 %v3399_v22, %v3398_v44 }
 0x3e5   :  { %3985 = vmatmul.mubr.bf16.vlgmr.msra.gmra.mrb[68].mxu0 %v3400_v36 }
 0x4b8   :  { %v3506_v26 = vpop.f32.mrb[68].mxu0 }
 0x4b9   :  { %v3507_v4 = vadd.f32 %v3906_v25, %v3506_v26  ;;  %v3986_v55 = vpop.f32.mrb[69].mxu0 }
 0x4ba   :  { %v3509_v28 = vpop.f32.mrb[70].mxu0 }
 0x4bb   :  { %3513 = vmax.xlane.f32.xlu0 %v3507_v4  ;;  %v3987_v30 = vpop.f32.mrb[71].mxu0  ;;  %v3510_v14 = vadd.f32 %v3906_v25, %v3509_v28 }
 0x4bf   :  { %3515 = vmax.xlane.f32.xlu0 %v3510_v14 }
 0x548   :  { %v3514_v31 = vpop.xlane.xlu0 %3513 }
 0x549   :  { %v3517_v32 = vsub.f32 %v3507_v4, %v3514_v31 }
 0x54b   :  { %v3519_v33 = vmul.f32 1.442695, %v3517_v32 }
 0x54c   :  { %v3516_v35 = vpop.xlane.xlu0 %3515 }
 0x54d   :  { %4404 = vpow2.f32 %v3519_v33  ;;  %v3518_v38 = vsub.f32 %v3510_v14, %v3516_v35 }
 0x54f   :  { %v3521_v12 = vmul.f32 1.442695, %v3518_v38 }
 0x551   :  { %4406 = vpow2.f32 %v3521_v12 }
 0x557   :  { %v4405_v39 = vpop.eup %4404 }
 0x558   :  { %3523 = vadd.xlane.f32.xlu1 %v4405_v39 }
 0x55b   :  { %v4407_v40 = vpop.eup %4406 }
 0x55c   :  { %3525 = vadd.xlane.f32.xlu1 %v4407_v40 }
 0x5e5   :  { %v3524_v41 = vpop.xlane.xlu1 %3523 }
 0x5e6   :  { %4408 = vrcp.f32 %v3524_v41 }
 0x5e9   :  { %v3526_v42 = vpop.xlane.xlu1 %3525 }
 0x5ea   :  { %4410 = vrcp.f32 %v3526_v42 }
 0x5f0   :  { %v4409_v43 = vpop.eup %4408 }
 0x5f1   :  { %v3529_v45 = vmul.f32 %v4409_v43, %v4405_v39 }
 0x5f3   :  { %3531 = vst [vmem:[%s5748_s9] sm:$0xff] %v3529_v45 }
 0x5f4   :  { %v4411_v46 = vpop.eup %4410 }
 0x5f5   :  { %v3530_v48 = vmul.f32 %v4411_v46, %v4407_v40 }
 0x5f7   :  { %3532 = vst [vmem:[%s5748_s9 + $0x8] sm:$0xff] %v3530_v48 }
 0x5f8   :  { %3537 = vsyncpa [#allocation3], 1 }
 0x5f9   :  { %3538 = vsyncpa [#allocation5], 1 }

</bundles_post_ra>
